<compile_context>
chip_gen: v7x
topology: tpu7x:2x2x1
jax: 0.10.0
libtpu: 0.0.40
codegen_flags: <defaults>
</compile_context>

<pallas_src>
import functools

import jax
import jax.numpy as jnp
from jax import lax
from jax.experimental import pallas as pl
from jax.experimental.pallas import tpu as pltpu


def _sym_kernel(planes_ref, pts_ref, cp_ref, out_ref, *, res, n_pts, n_heads):
    # planes_ref: (1, 4, H)   rows = (nx, ny, nz, d), lane axis = plane index
    # pts_ref:    (1, 3, N)   rows = (x, y, z),       lane axis = point index
    # cp_ref:     (1, 3, R^3) rows = (x, y, z),       lane axis = linear voxel id
    # out_ref:    (1, 8, 128) lane-dense result tile:
    #             [0, 0] = sum_h mean_n ||reflected - cp||  (reflexion term)
    #             [0, 1] = ||n_hat n_hat^T - I||_F          (regularization term)
    planes = planes_ref[0]                      # (4, H)
    pts = pts_ref[0]                            # (3, N)
    cp = cp_ref[0]                              # (3, R^3)

    normals = planes[0:3, :]                    # (3, H)
    offsets = planes[3:4, :]                    # (1, H)
    # Single normalization (torch normalizes twice; the second is a no-op).
    n_hat = normals / jnp.sqrt(jnp.sum(normals * normals, axis=0, keepdims=True))

    # Replicate per-plane data along the lane axis so the whole (H*N) problem
    # is one lane-dense batch: column h*N + n  <->  (plane h, point n).
    cols = n_heads * n_pts
    pts_rep = jnp.concatenate([pts] * n_heads, axis=1)                        # (3, H*N)
    n_rep = jnp.concatenate(
        [jnp.broadcast_to(n_hat[:, h:h + 1], (3, n_pts)) for h in range(n_heads)],
        axis=1)                                                               # (3, H*N)
    d_rep = jnp.concatenate(
        [jnp.broadcast_to(offsets[:, h:h + 1], (1, n_pts)) for h in range(n_heads)],
        axis=1)                                                               # (1, H*N)

    # Planar reflection of every point about every plane.
    dist_to_plane = jnp.sum(n_rep * pts_rep, axis=0, keepdims=True) + d_rep   # (1, H*N)
    reflected = pts_rep - 2.0 * dist_to_plane * n_rep                         # (3, H*N)

    # Voxel index of each reflected point, clamped to the grid (as in torch).
    voxel_length = 1.0 / res
    vox = jnp.clip(jnp.floor(reflected / voxel_length), 0.0, float(res - 1))
    vox = vox.astype(jnp.int32)                                               # (3, H*N)
    lin = vox[0:1, :] * (res * res) + vox[1:2, :] * res + vox[2:3, :]         # (1, H*N)

    # One-hot gather on the MXU: cp(3, R^3) @ onehot(R^3, H*N) -> (3, H*N).
    # TODO(synk): for large voxel resolutions (R >= ~16) chunk this over R^3
    # tiles instead of materializing the full one-hot (VMEM scales as R^3).
    r3 = res * res * res
    row_ids = lax.broadcasted_iota(jnp.int32, (r3, cols), 0)
    onehot = (row_ids == lin).astype(jnp.float32)                             # (R^3, H*N)
    cp_g = jnp.dot(cp, onehot, preferred_element_type=jnp.float32)            # (3, H*N)
    # TODO(synk): `is_voxel_filled` is computed but never used by the torch loss; omitted.

    diff = reflected - cp_g
    point_dist = jnp.sqrt(jnp.sum(diff * diff, axis=0, keepdims=True))        # (1, H*N)
    # sum_h mean_n distance  ==  (sum over all H*N columns) / N
    refl = jnp.sum(point_dist) * (1.0 / n_pts)

    # Regularization (fused): ||A A^T - I_H||_F with A = n_hat^T (H x 3 rows).
    # Using ||A A^T||_F == ||A^T A||_F and trace(A A^T) == H (rows normalized):
    #   ||A A^T - I||_F^2 = ||A^T A||_F^2 - H
    # which avoids any in-kernel transpose of the (3, H) normals.
    m = lax.dot_general(n_hat, n_hat, (((1,), (1,)), ((), ())),
                        preferred_element_type=jnp.float32)                   # (3, 3)
    reg = jnp.sqrt(jnp.maximum(jnp.sum(m * m) - float(n_heads), 0.0))

    # Single lane-dense (8, 128) store per batch; scalars land in lanes 0 / 1.
    lane_ids = lax.broadcasted_iota(jnp.int32, (8, 128), 1)
    sub_ids = lax.broadcasted_iota(jnp.int32, (8, 128), 0)
    row0 = sub_ids == 0
    tile = jnp.where(row0 & (lane_ids == 0), refl,
                     jnp.where(row0 & (lane_ids == 1), reg, 0.0))
    out_ref[0] = tile


def sym_loss(y_pred, sample_points, voxel_grids_cp, reg_coef):
    """Pallas implementation of SymLoss.forward (voxel_grids is unused by the loss)."""
    y_pred = y_pred.astype(jnp.float32)
    sample_points = sample_points.astype(jnp.float32)
    voxel_grids_cp = voxel_grids_cp.astype(jnp.float32)

    B, H, _ = y_pred.shape
    _, N, _ = sample_points.shape
    R = voxel_grids_cp.shape[1]
    R3 = R * R * R

    # Lane-dense layouts for the kernel (small one-time XLA transposes).
    planes_t = jnp.transpose(y_pred, (0, 2, 1))                          # (B, 4, H)
    pts_t = jnp.transpose(sample_points, (0, 2, 1))                      # (B, 3, N)
    cp_t = jnp.transpose(voxel_grids_cp.reshape(B, R3, 3), (0, 2, 1))    # (B, 3, R^3)

    out = pl.pallas_call(
        functools.partial(_sym_kernel, res=R, n_pts=N, n_heads=H),
        out_shape=jax.ShapeDtypeStruct((B, 8, 128), jnp.float32),
        grid_spec=pltpu.PrefetchScalarGridSpec(
            num_scalar_prefetch=0,
            grid=(B,),
            in_specs=[
                pl.BlockSpec((1, 4, H), lambda b: (b, 0, 0)),
                pl.BlockSpec((1, 3, N), lambda b: (b, 0, 0)),
                pl.BlockSpec((1, 3, R3), lambda b: (b, 0, 0)),
            ],
            out_specs=pl.BlockSpec((1, 8, 128), lambda b: (b, 0, 0)),
        ),
        compiler_params=pltpu.CompilerParams(
            dimension_semantics=("parallel",)),
    )(planes_t, pts_t, cp_t)

    reflexion_loss = jnp.sum(out[:, 0, 0])          # sum over batches and heads
    reg_mean = jnp.mean(out[:, 0, 1])               # mean over batches
    total = reflexion_loss + reg_coef * reg_mean
    return total.reshape(1)  # matches torch's shape-(1,) return


def sym_loss_ref(y_pred, sample_points, voxel_grids_cp, reg_coef):
    """Pure-JAX reference mirroring the torch code."""
    B, H, _ = y_pred.shape
    R = voxel_grids_cp.shape[1]
    normals = y_pred[:, :, 0:3]
    normals = normals / jnp.linalg.norm(normals, axis=2, keepdims=True)
    gram = jnp.einsum('bid,bjd->bij', normals, normals) - jnp.eye(H)
    reg = jnp.sqrt(jnp.sum(gram * gram, axis=(1, 2)))
    refl = 0.0
    vl = 1.0 / R
    for b in range(B):
        for h in range(H):
            plane = y_pred[b, h]
            n_hat = plane[0:3] / jnp.linalg.norm(plane[0:3])
            d = plane[3]
            pts = sample_points[b]
            dist = pts @ n_hat + d
            reflected = pts - 2.0 * dist[:, None] * n_hat[None, :]
            vi = jnp.clip(jnp.floor(reflected / vl), 0, R - 1).astype(jnp.int32)
            cp = voxel_grids_cp[b][vi[:, 0], vi[:, 1], vi[:, 2]]
            refl = refl + jnp.mean(jnp.linalg.norm(reflected - cp, axis=1))
    return refl + reg_coef * jnp.mean(reg)


if __name__ == "__main__":
    key = jax.random.PRNGKey(0)
    B, H, N, R = 2, 3, 128, 8   # batch, heads(planes), sample points, voxel resolution
    k1, k2, k3, k4 = jax.random.split(key, 4)

    y_pred = jax.random.normal(k1, (B, H, 4), dtype=jnp.float32)
    sample_points = jax.random.uniform(k2, (B, N, 3), dtype=jnp.float32)
    voxel_grids_cp = jax.random.uniform(k3, (B, R, R, R, 3), dtype=jnp.float32)
    voxel_grids = (jax.random.uniform(k4, (B, 1, R, R, R)) > 0.5).astype(jnp.float32)  # unused
    reg_coef = 25.0

    out = jax.block_until_ready(sym_loss(y_pred, sample_points, voxel_grids_cp, reg_coef))
    ref = sym_loss_ref(y_pred, sample_points, voxel_grids_cp, reg_coef)

    assert out.shape == (1,), out.shape
    assert jnp.allclose(out[0], ref, rtol=1e-3, atol=1e-3), (out, ref)
    print("KERNEL_OK")
</pallas_src>

<mosaic_0001>
module attributes {stable_mosaic.version = 11 : i64} {
  func.func @_sym_kernel(%arg0: i32, %arg1: memref<1x4x3xf32, #tpu.memory_space<vmem>>, %arg2: memref<1x3x128xf32, #tpu.memory_space<vmem>>, %arg3: memref<1x3x512xf32, #tpu.memory_space<vmem>>, %arg4: memref<1x8x128xf32, #tpu.memory_space<vmem>>) attributes {dimension_semantics = [#tpu.dimension_semantics<parallel>], iteration_bounds = array<i64: 2>, scalar_prefetch = 0 : i64, scratch_operands = 0 : i64, tpu.core_type = #tpu.core_type<tc>, window_params = [{transform_indices = @transform_0, window_bounds = array<i64: 1, 4, 3>}, {transform_indices = @transform_1, window_bounds = array<i64: 1, 3, 128>}, {transform_indices = @transform_2, window_bounds = array<i64: 1, 3, 512>}, {transform_indices = @transform_3, window_bounds = array<i64: 1, 8, 128>}]} {
    %c0 = arith.constant 0 : index
    %c0_0 = arith.constant 0 : index
    %c0_1 = arith.constant 0 : index
    %0 = vector.load %arg1[%c0, %c0_0, %c0_1] : memref<1x4x3xf32, #tpu.memory_space<vmem>>, vector<1x4x3xf32>
    %1 = vector.shape_cast %0 : vector<1x4x3xf32> to vector<4x3xf32>
    %c0_2 = arith.constant 0 : index
    %c0_3 = arith.constant 0 : index
    %c0_4 = arith.constant 0 : index
    %2 = vector.load %arg2[%c0_2, %c0_3, %c0_4] : memref<1x3x128xf32, #tpu.memory_space<vmem>>, vector<1x3x128xf32>
    %3 = vector.shape_cast %2 : vector<1x3x128xf32> to vector<3x128xf32>
    %c0_5 = arith.constant 0 : index
    %c0_6 = arith.constant 0 : index
    %c0_7 = arith.constant 0 : index
    %4 = vector.load %arg3[%c0_5, %c0_6, %c0_7] : memref<1x3x512xf32, #tpu.memory_space<vmem>>, vector<1x3x512xf32>
    %5 = vector.shape_cast %4 : vector<1x3x512xf32> to vector<3x512xf32>
    %6 = vector.extract_strided_slice %1 {offsets = [0, 0], sizes = [3, 3], strides = [1, 1]} : vector<4x3xf32> to vector<3x3xf32>
    %7 = vector.extract_strided_slice %1 {offsets = [3, 0], sizes = [1, 3], strides = [1, 1]} : vector<4x3xf32> to vector<1x3xf32>
    %8 = arith.mulf %6, %6 : vector<3x3xf32>
    %cst = arith.constant dense<0.000000e+00> : vector<3xf32>
    %9 = vector.multi_reduction <add>, %8, %cst [0] : vector<3x3xf32> to vector<3xf32>
    %10 = vector.shape_cast %9 : vector<3xf32> to vector<1x3xf32>
    %11 = math.sqrt %10 : vector<1x3xf32>
    %12 = vector.broadcast %11 : vector<1x3xf32> to vector<3x3xf32>
    %13 = arith.divf %6, %12 : vector<3x3xf32>
    %14 = tpu.concatenate %3, %3, %3 in 1 : vector<3x128xf32>, vector<3x128xf32>, vector<3x128xf32> -> vector<3x384xf32>
    %15 = vector.extract_strided_slice %13 {offsets = [0, 0], sizes = [3, 1], strides = [1, 1]} : vector<3x3xf32> to vector<3x1xf32>
    %16 = vector.shape_cast %15 : vector<3x1xf32> to vector<3x1xf32>
    %17 = vector.broadcast %16 : vector<3x1xf32> to vector<3x128xf32>
    %18 = vector.extract_strided_slice %13 {offsets = [0, 1], sizes = [3, 1], strides = [1, 1]} : vector<3x3xf32> to vector<3x1xf32>
    %19 = vector.shape_cast %18 : vector<3x1xf32> to vector<3x1xf32>
    %20 = vector.broadcast %19 : vector<3x1xf32> to vector<3x128xf32>
    %21 = vector.extract_strided_slice %13 {offsets = [0, 2], sizes = [3, 1], strides = [1, 1]} : vector<3x3xf32> to vector<3x1xf32>
    %22 = vector.shape_cast %21 : vector<3x1xf32> to vector<3x1xf32>
    %23 = vector.broadcast %22 : vector<3x1xf32> to vector<3x128xf32>
    %24 = tpu.concatenate %17, %20, %23 in 1 : vector<3x128xf32>, vector<3x128xf32>, vector<3x128xf32> -> vector<3x384xf32>
    %25 = vector.extract_strided_slice %7 {offsets = [0, 0], sizes = [1, 1], strides = [1, 1]} : vector<1x3xf32> to vector<1x1xf32>
    %26 = vector.shape_cast %25 : vector<1x1xf32> to vector<1x1xf32>
    %27 = vector.broadcast %26 : vector<1x1xf32> to vector<1x128xf32>
    %28 = vector.extract_strided_slice %7 {offsets = [0, 1], sizes = [1, 1], strides = [1, 1]} : vector<1x3xf32> to vector<1x1xf32>
    %29 = vector.shape_cast %28 : vector<1x1xf32> to vector<1x1xf32>
    %30 = vector.broadcast %29 : vector<1x1xf32> to vector<1x128xf32>
    %31 = vector.extract_strided_slice %7 {offsets = [0, 2], sizes = [1, 1], strides = [1, 1]} : vector<1x3xf32> to vector<1x1xf32>
    %32 = vector.shape_cast %31 : vector<1x1xf32> to vector<1x1xf32>
    %33 = vector.broadcast %32 : vector<1x1xf32> to vector<1x128xf32>
    %34 = tpu.concatenate %27, %30, %33 in 1 : vector<1x128xf32>, vector<1x128xf32>, vector<1x128xf32> -> vector<1x384xf32>
    %35 = arith.mulf %24, %14 : vector<3x384xf32>
    %cst_8 = arith.constant dense<0.000000e+00> : vector<384xf32>
    %36 = vector.multi_reduction <add>, %35, %cst_8 [0] : vector<3x384xf32> to vector<384xf32>
    %37 = vector.shape_cast %36 : vector<384xf32> to vector<1x384xf32>
    %38 = arith.addf %37, %34 : vector<1x384xf32>
    %cst_9 = arith.constant 2.000000e+00 : f32
    %39 = vector.broadcast %cst_9 : f32 to vector<1x384xf32>
    %40 = arith.mulf %39, %38 : vector<1x384xf32>
    %41 = vector.broadcast %40 : vector<1x384xf32> to vector<3x384xf32>
    %42 = arith.mulf %41, %24 : vector<3x384xf32>
    %43 = arith.subf %14, %42 : vector<3x384xf32>
    %cst_10 = arith.constant 1.250000e-01 : f32
    %44 = vector.broadcast %cst_10 : f32 to vector<3x384xf32>
    %45 = arith.divf %43, %44 : vector<3x384xf32>
    %46 = math.floor %45 : vector<3x384xf32>
    %cst_11 = arith.constant 0.000000e+00 : f32
    %cst_12 = arith.constant 7.000000e+00 : f32
    %47 = vector.broadcast %cst_11 : f32 to vector<3x384xf32>
    %48 = arith.maximumf %47, %46 : vector<3x384xf32>
    %49 = vector.broadcast %cst_12 : f32 to vector<3x384xf32>
    %50 = arith.minimumf %49, %48 : vector<3x384xf32>
    %51 = arith.fptosi %50 : vector<3x384xf32> to vector<3x384xi32>
    %52 = vector.extract_strided_slice %51 {offsets = [0, 0], sizes = [1, 384], strides = [1, 1]} : vector<3x384xi32> to vector<1x384xi32>
    %c64_i32 = arith.constant 64 : i32
    %53 = vector.broadcast %c64_i32 : i32 to vector<1x384xi32>
    %54 = arith.muli %52, %53 : vector<1x384xi32>
    %55 = vector.extract_strided_slice %51 {offsets = [1, 0], sizes = [1, 384], strides = [1, 1]} : vector<3x384xi32> to vector<1x384xi32>
    %c8_i32 = arith.constant 8 : i32
    %56 = vector.broadcast %c8_i32 : i32 to vector<1x384xi32>
    %57 = arith.muli %55, %56 : vector<1x384xi32>
    %58 = arith.addi %54, %57 : vector<1x384xi32>
    %59 = vector.extract_strided_slice %51 {offsets = [2, 0], sizes = [1, 384], strides = [1, 1]} : vector<3x384xi32> to vector<1x384xi32>
    %60 = arith.addi %58, %59 : vector<1x384xi32>
    %61 = tpu.iota {dimensions = array<i32: 0>} : vector<512x384xi32>
    %62 = vector.broadcast %60 : vector<1x384xi32> to vector<512x384xi32>
    %63 = arith.cmpi eq, %61, %62 : vector<512x384xi32>
    %64 = arith.extui %63 : vector<512x384xi1> to vector<512x384xi32>
    %65 = arith.sitofp %64 : vector<512x384xi32> to vector<512x384xf32>
    %cst_13 = arith.constant dense<0.000000e+00> : vector<3x384xf32>
    %66 = tpu.matmul %5, %65, %cst_13 {dimension_numbers = #tpu.dot_dimension_numbers<[1], [0], [0], [1], [0, 0, 1, 1], [], []>} : vector<3x512xf32>, vector<512x384xf32>, vector<3x384xf32> -> vector<3x384xf32>
    %67 = arith.subf %43, %66 : vector<3x384xf32>
    %68 = arith.mulf %67, %67 : vector<3x384xf32>
    %cst_14 = arith.constant dense<0.000000e+00> : vector<384xf32>
    %69 = vector.multi_reduction <add>, %68, %cst_14 [0] : vector<3x384xf32> to vector<384xf32>
    %70 = vector.shape_cast %69 : vector<384xf32> to vector<1x384xf32>
    %71 = math.sqrt %70 : vector<1x384xf32>
    %72 = vector.shape_cast %71 : vector<1x384xf32> to vector<1x1x384xf32>
    %cst_15 = arith.constant dense<0.000000e+00> : vector<1xf32>
    %73 = vector.multi_reduction <add>, %72, %cst_15 [1, 2] : vector<1x1x384xf32> to vector<1xf32>
    %74 = vector.shape_cast %73 : vector<1xf32> to vector<1x1x1xf32>
    %75 = vector.extract %74[0, 0, 0] : f32 from vector<1x1x1xf32>
    %cst_16 = arith.constant 7.812500e-03 : f32
    %76 = arith.mulf %75, %cst_16 : f32
    %cst_17 = arith.constant dense<0.000000e+00> : vector<3x3xf32>
    %77 = tpu.matmul %13, %13, %cst_17 {dimension_numbers = #tpu.dot_dimension_numbers<[1], [1], [0], [0], [0, 0, 1, 0], [], []>} : vector<3x3xf32>, vector<3x3xf32>, vector<3x3xf32> -> vector<3x3xf32>
    %78 = arith.mulf %77, %77 : vector<3x3xf32>
    %79 = vector.shape_cast %78 : vector<3x3xf32> to vector<1x3x3xf32>
    %cst_18 = arith.constant dense<0.000000e+00> : vector<1xf32>
    %80 = vector.multi_reduction <add>, %79, %cst_18 [1, 2] : vector<1x3x3xf32> to vector<1xf32>
    %81 = vector.shape_cast %80 : vector<1xf32> to vector<1x1x1xf32>
    %82 = vector.extract %81[0, 0, 0] : f32 from vector<1x1x1xf32>
    %cst_19 = arith.constant 3.000000e+00 : f32
    %83 = arith.subf %82, %cst_19 : f32
    %cst_20 = arith.constant 0.000000e+00 : f32
    %84 = arith.maximumf %83, %cst_20 : f32
    %85 = math.sqrt %84 : f32
    %86 = tpu.iota {dimensions = array<i32: 1>} : vector<8x128xi32>
    %87 = tpu.iota {dimensions = array<i32: 0>} : vector<8x128xi32>
    %c0_i32 = arith.constant 0 : i32
    %88 = vector.broadcast %c0_i32 : i32 to vector<8x128xi32>
    %89 = arith.cmpi eq, %87, %88 : vector<8x128xi32>
    %c0_i32_21 = arith.constant 0 : i32
    %90 = vector.broadcast %c0_i32_21 : i32 to vector<8x128xi32>
    %91 = arith.cmpi eq, %86, %90 : vector<8x128xi32>
    %92 = arith.andi %89, %91 : vector<8x128xi1>
    %c1_i32 = arith.constant 1 : i32
    %93 = vector.broadcast %c1_i32 : i32 to vector<8x128xi32>
    %94 = arith.cmpi eq, %86, %93 : vector<8x128xi32>
    %95 = arith.andi %89, %94 : vector<8x128xi1>
    %cst_22 = arith.constant 0.000000e+00 : f32
    %96 = vector.broadcast %85 : f32 to vector<8x128xf32>
    %97 = vector.broadcast %cst_22 : f32 to vector<8x128xf32>
    %98 = arith.select %95, %96, %97 : vector<8x128xi1>, vector<8x128xf32>
    %99 = vector.broadcast %76 : f32 to vector<8x128xf32>
    %100 = arith.select %92, %99, %98 : vector<8x128xi1>, vector<8x128xf32>
    %c0_23 = arith.constant 0 : index
    %c0_24 = arith.constant 0 : index
    %c0_25 = arith.constant 0 : index
    %101 = vector.load %arg4[%c0_23, %c0_24, %c0_25] : memref<1x8x128xf32, #tpu.memory_space<vmem>>, vector<1x8x128xf32>
    %102 = vector.shape_cast %101 : vector<1x8x128xf32> to vector<8x128xf32>
    %103 = vector.shape_cast %100 : vector<8x128xf32> to vector<1x8x128xf32>
    tpu.vector_store %arg4[%c0_23, %c0_24, %c0_25], %103 {strides = array<i32>} : memref<1x8x128xf32, #tpu.memory_space<vmem>>, vector<1x8x128xf32>,
    return
  }
  func.func @transform_0(%arg0: i32) -> (i32, i32, i32) {
    %c0_i32 = arith.constant 0 : i32
    %c0_i32_0 = arith.constant 0 : i32
    %c0_i32_1 = arith.constant 0 : i32
    return %arg0, %c0_i32, %c0_i32_0 : i32, i32, i32
  }
  func.func @transform_1(%arg0: i32) -> (i32, i32, i32) {
    %c0_i32 = arith.constant 0 : i32
    %c0_i32_0 = arith.constant 0 : i32
    %c0_i32_1 = arith.constant 0 : i32
    return %arg0, %c0_i32, %c0_i32_0 : i32, i32, i32
  }
  func.func @transform_2(%arg0: i32) -> (i32, i32, i32) {
    %c0_i32 = arith.constant 0 : i32
    %c0_i32_0 = arith.constant 0 : i32
    %c0_i32_1 = arith.constant 0 : i32
    return %arg0, %c0_i32, %c0_i32_0 : i32, i32, i32
  }
  func.func @transform_3(%arg0: i32) -> (i32, i32, i32) {
    %c0_i32 = arith.constant 0 : i32
    %c0_i32_0 = arith.constant 0 : i32
    %c0_i32_1 = arith.constant 0 : i32
    return %arg0, %c0_i32, %c0_i32_0 : i32, i32, i32
  }
}

</mosaic_0001>

<bundles_post_ra>
// kernel: tpu_custom_call.1
= control target key start
LH: loop header
LB: loop body
LE: loop exit
PB: predicated region body
PF: predicated region fallthrough
CT: control target
= control target key end

     0   :  { %8 = vsyncpa [#allocation3], 0  ;;  %s3639_s0 = inlined_call_operand.vmem [shape: f32[2,4,3], index: 0, kind: input, shape index: {}]   ;;  %s3640_s1 = inlined_call_operand.vmem [shape: f32[2,3,128], index: 1, kind: input, shape index: {}]   ;;  %s3641_s2 = inlined_call_operand.vmem [shape: f32[2,3,512], index: 2, kind: input, shape index: {}]   ;;  %s3642_s3 = inlined_call_operand.hbm [shape: f32[2,8,128], index: 3, kind: output, shape index: {}]  }
   0x1   :  { %10 = vsyncpa [#allocation3 + $0x1], 0  ;;  %s2385_s12 = smov 0   ;;  %s2387_s13 = smov 0  }
   0x2   :  { %s2389_s14 = smov 0   ;;  %s2391_s15 = smov 0  }
   0x3 LB: > { %s2406_s16 = sadd.s32 4294967295, %s2355_s15   ;;  %s1543_s17 = sadd.s32 4294967294, %s2355_s15   ;;  %s2355_s15 = sphi %s2391_s15, %s3756_s15   ;;  %s2351_s14 = sphi %s2389_s14, %s3755_s14   ;;  %s2347_s13 = sphi %s2387_s13, %s3754_s13   ;;  %s2343_s12 = sphi %s2385_s12, %s3753_s12  }
   0x4   : > { %s2410_s18 = sadd.s32 1, %s2355_s15   ;;  %s101_s19 = sadd.s32 1, %s2351_s14 }
   0x5   : > { %s98_s20 = ssub.s32 %s2355_s15, %s2410_s18  ;;  %p111_p0 = scmp.ne.s32.totalorder %s2351_s14, %s2347_s13 }
   0x6   : > { %p99_p1 = scmp.eq.s32.totalorder %s98_s20, 0  ;;  %p112_p2 = scmp.eq.s32.totalorder %s2406_s16, 1 }
   0x7   : > { %p117_p3 = scmp.ne.s32.totalorder %s2347_s13, %s2343_s12  ;;  %p118_p4 = scmp.eq.s32.totalorder %s1543_s17, 1 }
   0x8   : > { %s2421_s21 = scalar_select %p99_p1, %s2351_s14, %s101_s19  }
   0x9   : > { %p2423_p5 = por %p112_p2, %p111_p0  ;;  %p2427_p6 = por %p118_p4, %p117_p3 }
   0xa   : > { %p1546_p7 = scmp.ge.s32.totalorder %s2355_s15, 1  ;;  %p158_p8 = scmp.lt.s32.totalorder %s2355_s15, 3 }
   0xc   : > { %p159_p9 = pnand %p1546_p7, %p158_p8 }
   0xd   : > { %p190_p10 = scmp.lt.s32.totalorder (!%p159_p9), %s2406_s16, 1  ;;  %v2357_v0 = vmov (!%p159_p9), 1   ;;  %vm3644_vm0 = vcmask (!%p159_p9), 18432   ;;  %v2358_v5 = vmov (!%p159_p9), 0   ;;  %v2359_v9 = vmov (!%p159_p9), 2   ;;  %s2363_s17 = smov (!%p159_p9), 0.0  }
   0xe   : > { %162 = sbr.rel (%p159_p9) target bundleno = 919 (0x397), region = 32  ;;  %2275 = vset.pattern.permute.xlu1 (!%p159_p9), %v2357_v0  ;;  %2273 = vset.pattern.permute.xlu0 (!%p159_p9), %v2357_v0  ;;  %vm3643_vm3 = vcmask (!%p159_p9), 1042432   ;;  %v282_v36 = vlaneseq (!%p159_p9)  ;;  %s187_s20 = sand.u32 (!%p159_p9), 1, %s2347_s13  }
   0xf   : > { %s1940_s26 = sshll.u32 (!%p159_p9), %s2406_s16, 7  ;;  %s2364_s7 = smov (!%p159_p9), [#allocation2]  }
  0x10   : > { %v2469_v44 = vshrl.u32 (!%p159_p9), %v282_v36, 7 }
  0x12   : > { %v284_v52 = vsub.s32 (!%p159_p9), 3, %v2469_v44 }
  0x15   : > { %s2435_s24 = scalar_select %p190_p10, %s2406_s16, 1 }
  0x16   : > { %s1447_s16 = scalar_lea.sflag [#allocation3], %s187_s20 }
  0x17   : > { %s1548_s25 = sshll.u32 %s2435_s24, 2  ;;  %s1943_s29 = sshll.u32 %s2435_s24, 4 }
  0x18   : > { %s193_s28 = scalar_lea.vmem %s3639_s0, %s1548_s25  ;;  %s2453_s5 = scalar_lea.vmem %s3641_s2, %s1943_s29 }
  0x19   : > { %v203_v1 = vld [vmem:[%s193_s28] sm:$0xf]  ;;  %s197_s8 = scalar_lea.vmem %s3640_s1, %s1548_s25  ;;  %s1547_s24 = sshll.u32 %s187_s20, 3 }
  0x1a   : > { %244 = vperm.xlu1 %2275, %v203_v1   ;;  %v207_v2 = vmul.f32 %v203_v1, %v203_v1  ;;  %v2456_v19 = vld [vmem:[%s2453_s5] sm:$0x77]  ;;  %s189_s27 = scalar_lea.vmem [#allocation2], %s1547_s24 }
  0x1b   : > { %v989_v20 = vcombine.high %v2456_v19, %v2456_v19  ;;  %v204_v23 = vld [vmem:[%s197_s8] sm:$0x7]  ;;  %s1460_s28 = sshll.u32 %s189_s27, 4  ;;  %s2297_s8 = sshll.u32 %s2364_s7, 4  ;;  %s3599_s28 = int_to_ptr.vmem [resolvable:$true] %s1460_s28  ;;  %s2298_s8 = int_to_ptr.vmem [resolvable:$false] %s2297_s8 }
  0x1c   : > { %v209_v3 = vsel %vm3644_vm0, %v207_v2, 0.0  ;;  %s2293_s6 = scalar_lea.vmem %s3599_s28, 128  ;;  %p2300_p0 = scmp.lt.s32.totalorder %s3599_s28, %s2298_s8 }
  0x1d   : > { %v210_v4 = vrot.slane %v209_v3, 4  ;;  %1199 = vmatprep.mubr.f32.mxu1 %v989_v20  ;;  %1057 = vmatprep.mubr.f32.mxu0 %v989_v20  ;;  %p2294_p11 = scmp.ne.s32.totalorder %s3599_s28, %s2293_s6 }
  0x1e   : > { %2276 = vset.pattern.permute.xlu1 %v2358_v5 }
  0x1f   : > { %v211_v6 = vadd.f32 %v210_v4, %v209_v3  ;;  %240 = vperm.xlu1 %2276, %v203_v1   ;;  %p2295_p12 = pnand %p2294_p11, %p2423_p5 }
  0x21   : > { %v212_v7 = vrot.slane %v211_v6, 2  ;;  %p2296_p13 = pneg %p2295_p12 }
  0x23   : > { %v213_v8 = vadd.f32 %v212_v7, %v211_v6  ;;  %2277 = vset.pattern.permute.xlu1 %v2359_v9 }
  0x25   : > { %v214_v10 = vrot.slane %v213_v8, 1 }
  0x27   : > { %v215_v11 = vadd.f32 %v214_v10, %v213_v8 }
  0x29   : > { %2281 = vrsqrt.f32 %v215_v11  ;;  %vm218_vm1 = vcmp.eq.f32.partialorder %v215_v11, inf  ;;  %v221_v13 = vand.u32 2147483648, %v215_v11  ;;  %vm220_vm2 = vcmp.eq.f32.partialorder %v215_v11, 0.0 }
  0x33   : > { %v2282_v12 = vpop.eup %2281 }
  0x34   : > { %v217_v14 = vmul.f32 %v2282_v12, %v215_v11 }
  0x36   : > { %v219_v15 = vsel %vm218_vm1, %v215_v11, %v217_v14 }
  0x37   : > { %v222_v16 = vsel %vm220_vm2, %v221_v13, %v219_v15 }
  0x38   : > { %2283 = vrcp.f32 %v222_v16 }
  0x42   : > { %v2284_v17 = vpop.eup %2283 }
  0x43   : > { %v2444_v18 = vmul.f32 %v2284_v17, %v203_v1 }
  0x45   : > { %235 = vperm.xlu1 %2277, %v2444_v18   ;;  %231 = vperm.xlu0 %2273, %v2444_v18  }
  0x49   : > { %2274 = vset.pattern.permute.xlu0 %v2358_v5 }
  0x4a   : > { %227 = vperm.xlu0 %2274, %v2444_v18  }
  0x4e   : > { %2278 = vset.pattern.permute.xlu0 %v2359_v9 }
  0x4f   : > { %248 = vperm.xlu0 %2278, %v203_v1  }
  0x99   : > { %v245_v21 = vpop.permute.xlu1 %244 }
  0x9e   : > { %v241_v22 = vpop.permute.xlu1 %240 }
  0xc4   : > { %v236_v24 = vpop.permute.xlu1 %235  ;;  %v232_v25 = vpop.permute.xlu0 %231 }
  0xc5   : > { %v253_v26 = vmul.f32 %v236_v24, %v204_v23  ;;  %v252_v27 = vmul.f32 %v232_v25, %v204_v23 }
  0xc7   : > { %v269_v28 = vsel %vm3643_vm3, %v253_v26, 0.0  ;;  %v262_v29 = vsel %vm3643_vm3, %v252_v27, 0.0 }
  0xc8   : > { %v270_v30 = vrot.slane %v269_v28, 4  ;;  %v263_v31 = vrot.slane %v262_v29, 4 }
  0xc9   : > { %v228_v32 = vpop.permute.xlu0 %227 }
  0xca   : > { %v271_v33 = vadd.f32 %v270_v30, %v269_v28  ;;  %v264_v34 = vadd.f32 %v263_v31, %v262_v29  ;;  %v251_v35 = vmul.f32 %v228_v32, %v204_v23 }
  0xcc   : > { %v265_v37 = vrot.slane %v264_v34, 2  ;;  %v255_v38 = vsel %vm3643_vm3, %v251_v35, 0.0  ;;  %v272_v39 = vrot.slane %v271_v33, 2 }
  0xcd   : > { %v256_v40 = vrot.slane %v255_v38, 4 }
  0xce   : > { %v266_v41 = vadd.f32 %v265_v37, %v264_v34  ;;  %v273_v42 = vadd.f32 %v272_v39, %v271_v33  ;;  %v249_v48 = vpop.permute.xlu0 %248  ;;  %v401_v33 = vsub.s32 0, %v2469_v44 }
  0xcf   : > { %v257_v43 = vadd.f32 %v256_v40, %v255_v38  ;;  %v336_v40 = vadd.s32 8, %v2469_v44 }
  0xd0   : > { %v267_v45 = vrot.slane %v266_v41, 1  ;;  %v274_v46 = vrot.slane %v273_v42, 1 }
  0xd1   : > { %v258_v47 = vrot.slane %v257_v43, 2 }
  0xd2   : > { %v268_v49 = vadd.f32 %v267_v45, %v266_v41  ;;  %v275_v50 = vadd.f32 %v274_v46, %v273_v42  ;;  %v2484_v41 = vadd.s32 128, %v2469_v44  ;;  %v2487_v46 = vadd.s32 136, %v2469_v44 }
  0xd3   : > { %v259_v51 = vadd.f32 %v258_v47, %v257_v43 }
  0xd4   : > { %v277_v53 = vadd.f32 %v268_v49, %v245_v21  ;;  %v278_v54 = vadd.f32 %v275_v50, %v249_v48  ;;  %v2492_v48 = vadd.s32 144, %v2469_v44  ;;  %v2495_v49 = vadd.s32 152, %v2469_v44 }
  0xd5   : > { %v260_v55 = vrot.slane %v259_v51, 1 }
  0xd6   : > { %v280_v56 = vmul.f32 2.0, %v277_v53  ;;  %v281_v57 = vmul.f32 2.0, %v278_v54  ;;  %v337_v53 = vadd.s32 16, %v2469_v44  ;;  %v338_v54 = vadd.s32 24, %v2469_v44 }
  0xd7   : > { %v261_v58 = vadd.f32 %v260_v55, %v259_v51 }
  0xd8   : > { %v289_v59 = vrot.slane %v280_v56, %v284_v52  ;;  %v293_v60 = vrot.slane %v281_v57, %v284_v52  ;;  %v2360_v56 = vmov 1.0|1.0  }
  0xd9   : > { %v276_v61 = vadd.f32 %v261_v58, %v241_v22  ;;  %v2522_v58 = vadd.s32 160, %v2469_v44 }
  0xda   : > { %v295_v62 = vmul.f32 %v289_v59, %v232_v25  ;;  %v296_v63 = vmul.f32 %v293_v60, %v236_v24  ;;  %v2525_v59 = vadd.s32 168, %v2469_v44  ;;  %v339_v60 = vadd.s32 32, %v2469_v44 }
  0xdb   : > { %v279_v0 = vmul.f32 2.0, %v276_v61  ;;  %v340_v61 = vadd.s32 40, %v2469_v44 }
  0xdc   : > { %v2472_v1 = vsub.f32 %v204_v23, %v295_v62  ;;  %v2474_v2 = vsub.f32 %v204_v23, %v296_v63  ;;  %v2548_v62 = vadd.s32 176, %v2469_v44  ;;  %v2551_v63 = vadd.s32 184, %v2469_v44 }
  0xdd   : > { %v285_v3 = vrot.slane %v279_v0, %v284_v52  ;;  %v341_v0 = vadd.s32 48, %v2469_v44 }
  0xde   : > { %v302_v4 = vmul.f32 8.0, %v2472_v1  ;;  %v303_v5 = vmul.f32 8.0, %v2474_v2 }
  0xdf   : > { %v294_v6 = vmul.f32 %v285_v3, %v228_v32  ;;  %v342_v3 = vadd.s32 56, %v2469_v44 }
  0xe0   : > { %v305_v7 = vfloor.f32 %v302_v4  ;;  %v306_v8 = vfloor.f32 %v303_v5  ;;  %v2576_v4 = vadd.s32 192, %v2469_v44  ;;  %v2579_v5 = vadd.s32 200, %v2469_v44 }
  0xe1   : > { %v2478_v9 = vsub.f32 %v204_v23, %v294_v6  ;;  %v343_v6 = vadd.s32 64, %v2469_v44 }
  0xe2   : > { %v308_v10 = vmax.f32 %v305_v7, 0.0  ;;  %v309_v11 = vmax.f32 %v306_v8, 0.0  ;;  %v344_v7 = vadd.s32 72, %v2469_v44  ;;  %v2604_v8 = vadd.s32 208, %v2469_v44 }
  0xe3   : > { %v301_v12 = vmul.f32 8.0, %v2478_v9 }
  0xe4   : > { %v311_v13 = vmin.f32 %v308_v10, 7.0  ;;  %v312_v14 = vmin.f32 %v309_v11, 7.0  ;;  %v2607_v10 = vadd.s32 216, %v2469_v44  ;;  %v345_v11 = vadd.s32 80, %v2469_v44 }
  0xe5   : > { %v304_v15 = vfloor.f32 %v301_v12  ;;  %v346_v12 = vadd.s32 88, %v2469_v44 }
  0xe6   : > { %v2217_v16 = vtrunc.f32 %v311_v13  ;;  %v2219_v17 = vtrunc.f32 %v312_v14  ;;  %v2625_v13 = vadd.s32 224, %v2469_v44  ;;  %v2634_v14 = vadd.s32 232, %v2469_v44 }
  0xe7   : > { %v307_v20 = vmax.f32 %v304_v15, 0.0  ;;  %v2637_v15 = vadd.s32 96, %v2469_v44 }
  0xe8   : > { %v2218_v21 = vcvt.f32.s32 %v2217_v16  ;;  %v2220_v22 = vcvt.f32.s32 %v2219_v17  ;;  %v348_v16 = vadd.s32 104, %v2469_v44  ;;  %v2646_v17 = vadd.s32 240, %v2469_v44 }
  0xe9   : > { %v310_v24 = vmin.f32 %v307_v20, 7.0  ;;  %v2659_v20 = vadd.s32 248, %v2469_v44 }
  0xea   : > { %v320_v25 = vmul.u32 8, %v2218_v21  ;;  %v318_v27 = vmul.u32 64, %v2220_v22  ;;  %v330_v32 = vrot.slane %v2220_v22, 2  ;;  %v329_v35 = vrot.slane %v2218_v21, 2 }
  0xeb   : > { %v2215_v26 = vtrunc.f32 %v310_v24  ;;  %v321_v28 = vmul.u32 8, %v2220_v22  ;;  %v317_v29 = vmul.u32 64, %v2218_v21  ;;  %v2662_v21 = vadd.s32 112, %v2469_v44 }
  0xec   : > { %v323_v23 = vrot.slane %v320_v25, 1  ;;  %v2674_v22 = vadd.s32 120, %v2469_v44  ;;  %v2677_v24 = vadd.s32 384, %v2469_v44  ;;  %v2686_v25 = vadd.s32 392, %v2469_v44 }
  0xed   : > { %v2216_v30 = vcvt.f32.s32 %v2215_v26  ;;  %v324_v31 = vrot.slane %v321_v28, 1  ;;  %v2689_v26 = vadd.s32 256, %v2469_v44  ;;  %v2703_v28 = vadd.s32 400, %v2469_v44 }
  0xee   : > { %v326_v34 = vadd.s32 %v323_v23, %v317_v29  ;;  %v2717_v29 = vadd.s32 408, %v2469_v44  ;;  %v2720_v23 = vadd.s32 272, %v2469_v44 }
  0xef   : > { %v319_v37 = vmul.u32 8, %v2216_v30  ;;  %v327_v38 = vadd.s32 %v324_v31, %v318_v27  ;;  %v316_v42 = vmul.u32 64, %v2216_v30  ;;  %v328_v51 = vrot.slane %v2216_v30, 2 }
  0xf0   : > { %v332_v39 = vadd.s32 %v329_v35, %v326_v34  ;;  %v2700_v27 = vadd.s32 264, %v2469_v44  ;;  %v2732_v30 = vadd.s32 280, %v2469_v44  ;;  %v2735_v31 = vadd.s32 416, %v2469_v44 }
  0xf1   : > { %v322_v43 = vrot.slane %v319_v37, 1  ;;  %v333_v45 = vadd.s32 %v330_v32, %v327_v38  ;;  %v2746_v32 = vadd.s32 424, %v2469_v44  ;;  %v2762_v34 = vadd.s32 296, %v2469_v44 }
  0xf2   : > { %v2489_v47 = vrot.slane %v332_v39, %v401_v33  ;;  %v2765_v35 = vadd.s32 432, %v2469_v44  ;;  %v2780_v37 = vadd.s32 440, %v2469_v44  ;;  %v2783_v38 = vadd.s32 304, %v2469_v44  ;;  %v2792_v39 = vld [vmem:[%s2453_s5 + $0x8] sm:$0x77]  ;;  %s3597_s5 = scalar_lea.hbm %s3642_s3, %s1940_s26 }
  0xf3   : > { %v325_v50 = vadd.s32 %v322_v43, %v316_v42  ;;  %v2497_v52 = vrot.slane %v333_v45, %v401_v33  ;;  %v2802_v42 = vadd.s32 448, %v2469_v44  ;;  %v2815_v43 = vadd.s32 456, %v2469_v44 }
  0xf4   : > { %vm412_vm4 = vcmp.eq.s32.totalorder %v2469_v44, %v2489_v47  ;;  %vm415_vm5 = vcmp.eq.s32.totalorder %v336_v40, %v2489_v47  ;;  %v2818_v45 = vadd.s32 320, %v2469_v44 }
  0xf5   : > { %v331_v55 = vadd.s32 %v328_v51, %v325_v50  ;;  %vm2021_vm6 = vmpackc.low %vm415_vm5, %vm412_vm4  ;;  %vm461_vm7 = vcmp.eq.s32.totalorder %v2484_v41, %v2497_v52  ;;  %vm464_vm8 = vcmp.eq.s32.totalorder %v2487_v46, %v2497_v52  ;;  %vm413_vm9 = vcmp.eq.s32.totalorder %v2469_v44, %v2497_v52 }
  0xf6   : > { %2022 = vmatprep.subr.msk.bf16.mxu0 %vm2021_vm6, %v2360_v56  ;;  %vm2149_vm10 = vmpackc.low %vm464_vm8, %vm461_vm7  ;;  %vm416_vm11 = vcmp.eq.s32.totalorder %v336_v40, %v2497_v52  ;;  %vm467_vm12 = vcmp.eq.s32.totalorder %v2492_v48, %v2497_v52  ;;  %vm470_vm13 = vcmp.eq.s32.totalorder %v2495_v49, %v2497_v52  ;;  %vm419_vm14 = vcmp.eq.s32.totalorder %v337_v53, %v2497_v52 }
  0xf7   : > { %v2517_v57 = vrot.slane %v331_v55, %v401_v33  ;;  %2150 = vmatprep.subr.msk.bf16.mxu1 %vm2149_vm10, %v2360_v56  ;;  %vm2151_vm15 = vmpackc.low %vm416_vm11, %vm413_vm9  ;;  %vm422_vm1 = vcmp.eq.s32.totalorder %v338_v54, %v2497_v52  ;;  %vm418_vm4 = vcmp.eq.s32.totalorder %v337_v53, %v2489_v47  ;;  %vm421_vm5 = vcmp.eq.s32.totalorder %v338_v54, %v2489_v47 }
  0xf8   : > { %2152 = vmatpush3.bf16.msk.msra.mxu1 %vm2151_vm15, %v2360_v56  ;;  %vm2153_vm2 = vmpackc.low %vm470_vm13, %vm467_vm12  ;;  %vm473_vm9 = vcmp.eq.s32.totalorder %v2522_v58, %v2497_v52  ;;  %vm476_vm10 = vcmp.eq.s32.totalorder %v2525_v59, %v2497_v52  ;;  %vm428_vm3 = vcmp.eq.s32.totalorder %v340_v61, %v2497_v52  ;;  %v2749_v33 = vadd.s32 288, %v2469_v44 }
  0xf9   : > { %2154 = vmatprep.subr.msk.bf16.mxu1 %vm2153_vm2, %v2360_v56  ;;  %vm411_vm6 = vcmp.eq.s32.totalorder %v2469_v44, %v2517_v57  ;;  %vm414_vm7 = vcmp.eq.s32.totalorder %v336_v40, %v2517_v57  ;;  %vm2155_vm8 = vmpackc.low %vm422_vm1, %vm419_vm14  ;;  %vm417_vm12 = vcmp.eq.s32.totalorder %v337_v53, %v2517_v57  ;;  %vm420_vm13 = vcmp.eq.s32.totalorder %v338_v54, %v2517_v57 }
  0xfa   : > { %vm2023_vm11 = vmpackc.low %vm414_vm7, %vm411_vm6  ;;  %vm425_vm2 = vcmp.eq.s32.totalorder %v339_v60, %v2497_v52  ;;  %vm424_vm1 = vcmp.eq.s32.totalorder %v339_v60, %v2489_v47  ;;  %vm427_vm6 = vcmp.eq.s32.totalorder %v340_v61, %v2489_v47  ;;  %vm482_vm7 = vcmp.eq.s32.totalorder %v2551_v63, %v2497_v52 }
  0xfb   : > { %2024 = vmatpush1.bf16.msk.msra.mxu0 %vm2023_vm11, %v2360_v56  ;;  %vm2025_vm15 = vmpackc.low %vm421_vm5, %vm418_vm4  ;;  %vm479_vm5 = vcmp.eq.s32.totalorder %v2548_v62, %v2497_v52  ;;  %v2799_v40 = vadd.s32 312, %v2469_v44  ;;  %v2832_v50 = vadd.s32 328, %v2469_v44  ;;  %v2835_v51 = vadd.s32 464, %v2469_v44 }
  0xfc   : > { %2156 = vmatpush3.bf16.msk.msra.mxu1 %vm2155_vm8, %v2360_v56  ;;  %2026 = vmatprep.subr.msk.bf16.mxu0 %vm2025_vm15, %v2360_v56  ;;  %vm2157_vm14 = vmpackc.low %vm476_vm10, %vm473_vm9  ;;  %vm423_vm9 = vcmp.eq.s32.totalorder %v339_v60, %v2517_v57  ;;  %vm426_vm10 = vcmp.eq.s32.totalorder %v340_v61, %v2517_v57  ;;  %vm431_vm15 = vcmp.eq.s32.totalorder %v341_v0, %v2497_v52  ;;  %v2850_v53 = vadd.s32 472, %v2469_v44 }
  0xfd   : > { %2158 = vmatprep.subr.msk.bf16.mxu1 %vm2157_vm14, %v2360_v56  ;;  %vm2027_vm4 = vmpackc.low %vm420_vm13, %vm417_vm12  ;;  %vm434_vm12 = vcmp.eq.s32.totalorder %v342_v3, %v2497_v52  ;;  %vm430_vm13 = vcmp.eq.s32.totalorder %v341_v0, %v2489_v47  ;;  %v2854_v54 = vcombine.high %v2792_v39, %v2792_v39  ;;  %v2900_v55 = vadd.s32 336, %v2469_v44 }
  0xfe   : > { %vm2159_vm8 = vmpackc.low %vm428_vm3, %vm425_vm2  ;;  %vm433_vm2 = vcmp.eq.s32.totalorder %v342_v3, %v2489_v47  ;;  %vm524_vm0 = vcmp.eq.s32.totalorder %v2762_v34, %v2497_v52  ;;  %v2917_v60 = vadd.s32 480, %v2469_v44  ;;  %v2933_v61 = vadd.s32 488, %v2469_v44 }
  0xff   : > { %2028 = vmatpush1.bf16.msk.msra.mxu0 %vm2027_vm4, %v2360_v56  ;;  %vm2029_vm11 = vmpackc.low %vm427_vm6, %vm424_vm1  ;;  %vm485_vm1 = vcmp.eq.s32.totalorder %v2576_v4, %v2497_v52  ;;  %vm488_vm6 = vcmp.eq.s32.totalorder %v2579_v5, %v2497_v52 }
 0x100   : > { %2160 = vmatpush3.bf16.msk.msra.mxu1 %vm2159_vm8, %v2360_v56  ;;  %2030 = vmatprep.subr.msk.bf16.mxu0 %vm2029_vm11, %v2360_v56  ;;  %vm2161_vm3 = vmpackc.low %vm482_vm7, %vm479_vm5  ;;  %vm429_vm5 = vcmp.eq.s32.totalorder %v341_v0, %v2517_v57  ;;  %vm432_vm7 = vcmp.eq.s32.totalorder %v342_v3, %v2517_v57  ;;  %vm437_vm11 = vcmp.eq.s32.totalorder %v343_v6, %v2497_v52 }
 0x101   : > { %2162 = vmatprep.subr.msk.bf16.mxu1 %vm2161_vm3, %v2360_v56  ;;  %vm2031_vm14 = vmpackc.low %vm426_vm10, %vm423_vm9  ;;  %vm440_vm9 = vcmp.eq.s32.totalorder %v344_v7, %v2497_v52 }
 0x102   : > { %vm2163_vm4 = vmpackc.low %vm434_vm12, %vm431_vm15  ;;  %vm436_vm15 = vcmp.eq.s32.totalorder %v343_v6, %v2489_v47  ;;  %vm439_vm12 = vcmp.eq.s32.totalorder %v344_v7, %v2489_v47 }
 0x103   : > { %2032 = vmatpush1.bf16.msk.msra.mxu0 %vm2031_vm14, %v2360_v56  ;;  %vm2033_vm8 = vmpackc.low %vm433_vm2, %vm430_vm13  ;;  %vm491_vm13 = vcmp.eq.s32.totalorder %v2604_v8, %v2497_v52  ;;  %vm494_vm2 = vcmp.eq.s32.totalorder %v2607_v10, %v2497_v52 }
 0x104   : > { %2164 = vmatpush3.bf16.msk.msra.mxu1 %vm2163_vm4, %v2360_v56  ;;  %2034 = vmatprep.subr.msk.bf16.mxu0 %vm2033_vm8, %v2360_v56  ;;  %vm2165_vm10 = vmpackc.low %vm488_vm6, %vm485_vm1  ;;  %vm435_vm1 = vcmp.eq.s32.totalorder %v343_v6, %v2517_v57  ;;  %vm438_vm6 = vcmp.eq.s32.totalorder %v344_v7, %v2517_v57  ;;  %v3684_v7 = vmov 0 }
 0x105   : > { %2166 = vmatprep.subr.msk.bf16.mxu1 %vm2165_vm10, %v2360_v56  ;;  %vm2035_vm3 = vmpackc.low %vm432_vm7, %vm429_vm5  ;;  %vm443_vm5 = vcmp.eq.s32.totalorder %v345_v11, %v2497_v52  ;;  %vm446_vm7 = vcmp.eq.s32.totalorder %v346_v12, %v2497_v52 }
 0x106   : > { %vm2167_vm14 = vmpackc.low %vm440_vm9, %vm437_vm11  ;;  %vm442_vm11 = vcmp.eq.s32.totalorder %v345_v11, %v2489_v47  ;;  %vm445_vm9 = vcmp.eq.s32.totalorder %v346_v12, %v2489_v47 }
 0x107   : > { %2036 = vmatpush1.bf16.msk.msra.mxu0 %vm2035_vm3, %v2360_v56  ;;  %vm2037_vm4 = vmpackc.low %vm439_vm12, %vm436_vm15  ;;  %vm497_vm15 = vcmp.eq.s32.totalorder %v2625_v13, %v2497_v52  ;;  %vm500_vm12 = vcmp.eq.s32.totalorder %v2634_v14, %v2497_v52 }
 0x108   : > { %2168 = vmatpush3.bf16.msk.msra.mxu1 %vm2167_vm14, %v2360_v56  ;;  %2038 = vmatprep.subr.msk.bf16.mxu0 %vm2037_vm4, %v2360_v56  ;;  %vm2169_vm8 = vmpackc.low %vm494_vm2, %vm491_vm13  ;;  %vm441_vm13 = vcmp.eq.s32.totalorder %v345_v11, %v2517_v57  ;;  %vm444_vm2 = vcmp.eq.s32.totalorder %v346_v12, %v2517_v57 }
 0x109   : > { %2170 = vmatprep.subr.msk.bf16.mxu1 %vm2169_vm8, %v2360_v56  ;;  %vm2039_vm10 = vmpackc.low %vm438_vm6, %vm435_vm1  ;;  %vm449_vm1 = vcmp.eq.s32.totalorder %v2637_v15, %v2497_v52  ;;  %vm452_vm6 = vcmp.eq.s32.totalorder %v348_v16, %v2497_v52 }
 0x10a   : > { %vm2171_vm3 = vmpackc.low %vm446_vm7, %vm443_vm5  ;;  %vm448_vm5 = vcmp.eq.s32.totalorder %v2637_v15, %v2489_v47  ;;  %vm451_vm7 = vcmp.eq.s32.totalorder %v348_v16, %v2489_v47 }
 0x10b   : > { %2040 = vmatpush1.bf16.msk.msra.mxu0 %vm2039_vm10, %v2360_v56  ;;  %vm2041_vm14 = vmpackc.low %vm445_vm9, %vm442_vm11  ;;  %vm503_vm11 = vcmp.eq.s32.totalorder %v2646_v17, %v2497_v52  ;;  %vm506_vm9 = vcmp.eq.s32.totalorder %v2659_v20, %v2497_v52 }
 0x10c   : > { %2172 = vmatpush3.bf16.msk.msra.mxu1 %vm2171_vm3, %v2360_v56  ;;  %2042 = vmatprep.subr.msk.bf16.mxu0 %vm2041_vm14, %v2360_v56  ;;  %vm2173_vm4 = vmpackc.low %vm500_vm12, %vm497_vm15  ;;  %vm447_vm15 = vcmp.eq.s32.totalorder %v2637_v15, %v2517_v57  ;;  %vm450_vm12 = vcmp.eq.s32.totalorder %v348_v16, %v2517_v57 }
 0x10d   : > { %2174 = vmatprep.subr.msk.bf16.mxu1 %vm2173_vm4, %v2360_v56  ;;  %vm2043_vm8 = vmpackc.low %vm444_vm2, %vm441_vm13  ;;  %vm455_vm13 = vcmp.eq.s32.totalorder %v2662_v21, %v2497_v52  ;;  %vm458_vm2 = vcmp.eq.s32.totalorder %v2674_v22, %v2497_v52 }
 0x10e   : > { %vm2175_vm10 = vmpackc.low %vm452_vm6, %vm449_vm1  ;;  %vm454_vm1 = vcmp.eq.s32.totalorder %v2662_v21, %v2489_v47  ;;  %vm457_vm6 = vcmp.eq.s32.totalorder %v2674_v22, %v2489_v47 }
 0x10f   : > { %2044 = vmatpush1.bf16.msk.msra.mxu0 %vm2043_vm8, %v2360_v56  ;;  %vm2045_vm3 = vmpackc.low %vm451_vm7, %vm448_vm5  ;;  %vm557_vm5 = vcmp.eq.s32.totalorder %v2677_v24, %v2497_v52  ;;  %vm560_vm7 = vcmp.eq.s32.totalorder %v2686_v25, %v2497_v52 }
 0x110   : > { %2176 = vmatpush3.bf16.msk.msra.mxu1 %vm2175_vm10, %v2360_v56  ;;  %2046 = vmatprep.subr.msk.bf16.mxu0 %vm2045_vm3, %v2360_v56  ;;  %vm2177_vm14 = vmpackc.low %vm506_vm9, %vm503_vm11  ;;  %vm453_vm11 = vcmp.eq.s32.totalorder %v2662_v21, %v2517_v57  ;;  %vm456_vm9 = vcmp.eq.s32.totalorder %v2674_v22, %v2517_v57  ;;  %v3723_v21 = vmov 0  ;;  %v3727_v22 = vmov 0 }
 0x111   : > { %2178 = vmatprep.subr.msk.bf16.mxu1 %vm2177_vm14, %v2360_v56  ;;  %vm2047_vm4 = vmpackc.low %vm450_vm12, %vm447_vm15  ;;  %vm509_vm15 = vcmp.eq.s32.totalorder %v2689_v26, %v2497_v52  ;;  %vm512_vm12 = vcmp.eq.s32.totalorder %v2700_v27, %v2497_v52 }
 0x112   : > { %vm2179_vm8 = vmpackc.low %vm458_vm2, %vm455_vm13  ;;  %vm460_vm13 = vcmp.eq.s32.totalorder %v2484_v41, %v2489_v47  ;;  %vm463_vm2 = vcmp.eq.s32.totalorder %v2487_v46, %v2489_v47 }
 0x113   : > { %2048 = vmatpush1.bf16.msk.msra.mxu0 %vm2047_vm4, %v2360_v56  ;;  %vm2049_vm10 = vmpackc.low %vm457_vm6, %vm454_vm1  ;;  %vm563_vm1 = vcmp.eq.s32.totalorder %v2703_v28, %v2497_v52  ;;  %vm566_vm6 = vcmp.eq.s32.totalorder %v2717_v29, %v2497_v52  ;;  %vm459_vm4 = vcmp.eq.s32.totalorder %v2484_v41, %v2517_v57  ;;  %v2980_v41 = vadd.s32 496, %v2469_v44 }
 0x114   : > { %2180 = vmatpush3.bf16.msk.msra.mxu1 %vm2179_vm8, %v2360_v56  ;;  %2050 = vmatprep.subr.msk.bf16.mxu0 %vm2049_vm10, %v2360_v56  ;;  %vm2181_vm3 = vmpackc.low %vm560_vm7, %vm557_vm5  ;;  %vm462_vm5 = vcmp.eq.s32.totalorder %v2487_v46, %v2517_v57  ;;  %vm515_vm8 = vcmp.eq.s32.totalorder %v2720_v23, %v2497_v52  ;;  %vm469_vm10 = vcmp.eq.s32.totalorder %v2495_v49, %v2489_v47  ;;  %v3035_v46 = vadd.s32 504, %v2469_v44 }
 0x115   : > { %2182 = vmatprep.subr.msk.bf16.mxu1 %vm2181_vm3, %v2360_v56  ;;  %vm2051_vm14 = vmpackc.low %vm456_vm9, %vm453_vm11  ;;  %vm518_vm11 = vcmp.eq.s32.totalorder %v2732_v30, %v2497_v52  ;;  %vm466_vm9 = vcmp.eq.s32.totalorder %v2492_v48, %v2489_v47  ;;  %vm572_vm3 = vcmp.eq.s32.totalorder %v2746_v32, %v2497_v52 }
 0x116   : > { %vm2183_vm7 = vmpackc.low %vm512_vm12, %vm509_vm15  ;;  %vm569_vm12 = vcmp.eq.s32.totalorder %v2735_v31, %v2497_v52 }
 0x117   : > { %2052 = vmatpush1.bf16.msk.msra.mxu0 %vm2051_vm14, %v2360_v56  ;;  %1200 = vmatmul.mubr.f32.vlgmr.msra.gmra.mrb[0].mxu1 %v2456_v19  ;;  %vm2053_vm15 = vmpackc.low %vm463_vm2, %vm460_vm13  ;;  %vm468_vm2 = vcmp.eq.s32.totalorder %v2495_v49, %v2517_v57  ;;  %vm521_vm14 = vcmp.eq.s32.totalorder %v2749_v33, %v2497_v52  ;;  %v3172_v49 = vadd.s32 352, %v2469_v44 }
 0x118   : > { %2184 = vmatpush3.bf16.msk.msra.mxu1 %vm2183_vm7, %v2360_v56  ;;  %2054 = vmatprep.subr.msk.bf16.mxu0 %vm2053_vm15, %v2360_v56  ;;  %vm2185_vm13 = vmpackc.low %vm566_vm6, %vm563_vm1  ;;  %vm472_vm6 = vcmp.eq.s32.totalorder %v2522_v58, %v2489_v47  ;;  %vm481_vm15 = vcmp.eq.s32.totalorder %v2551_v63, %v2489_v47 }
 0x119   : > { %2186 = vmatprep.subr.msk.bf16.mxu1 %vm2185_vm13, %v2360_v56  ;;  %vm2055_vm1 = vmpackc.low %vm462_vm5, %vm459_vm4  ;;  %1269 = vmatprep.mubr.f32.mxu1 %v2854_v54  ;;  %vm578_vm5 = vcmp.eq.s32.totalorder %v2780_v37, %v2497_v52  ;;  %vm478_vm13 = vcmp.eq.s32.totalorder %v2548_v62, %v2489_v47 }
 0x11a   : > { %vm2187_vm4 = vmpackc.low %vm518_vm11, %vm515_vm8  ;;  %vm530_vm11 = vcmp.eq.s32.totalorder %v2799_v40, %v2497_v52 }
 0x11b   : > { %2056 = vmatpush1.bf16.msk.msra.mxu0 %vm2055_vm1, %v2360_v56  ;;  %vm2057_vm8 = vmpackc.low %vm469_vm10, %vm466_vm9  ;;  %vm584_vm10 = vcmp.eq.s32.totalorder %v2815_v43, %v2497_v52  ;;  %vm487_vm1 = vcmp.eq.s32.totalorder %v2579_v5, %v2489_v47 }
 0x11c   : > { %2188 = vmatpush3.bf16.msk.msra.mxu1 %vm2187_vm4, %v2360_v56  ;;  %2058 = vmatprep.subr.msk.bf16.mxu0 %vm2057_vm8, %v2360_v56  ;;  %vm2189_vm9 = vmpackc.low %vm572_vm3, %vm569_vm12  ;;  %vm3647_vm4 = vcmp.eq.s32.totalorder %v2492_v48, %v2517_v57  ;;  %vm533_vm3 = vcmp.eq.s32.totalorder %v2818_v45, %v2497_v52  ;;  %vm561_vm8 = vcmp.eq.s32.totalorder %v2703_v28, %v2517_v57  ;;  %v3096_v48 = vadd.s32 344, %v2469_v44 }
 0x11d   : > { %2190 = vmatprep.subr.msk.bf16.mxu1 %vm2189_vm9, %v2360_v56  ;;  %vm2059_vm12 = vmpackc.low %vm468_vm2, %vm3647_vm4  ;;  %vm539_vm2 = vcmp.eq.s32.totalorder %v2900_v55, %v2497_v52 }
 0x11e   : > { %vm2191_vm9 = vmpackc.low %vm524_vm0, %vm521_vm14  ;;  %vm3648_vm0 = vcmp.eq.s32.totalorder %v2525_v59, %v2489_v47 }
 0x11f   : > { %2060 = vmatpush1.bf16.msk.msra.mxu0 %vm2059_vm12, %v2360_v56  ;;  %vm2061_vm14 = vmpackc.low %vm3648_vm0, %vm472_vm6  ;;  %vm3649_vm12 = vcmp.eq.s32.totalorder %v2765_v35, %v2497_v52  ;;  %vm545_vm0 = vcmp.eq.s32.totalorder %v3172_v49, %v2497_v52 }
 0x120   : > { %2192 = vmatpush3.bf16.msk.msra.mxu1 %vm2191_vm9, %v2360_v56  ;;  %2062 = vmatprep.subr.msk.bf16.mxu0 %vm2061_vm14, %v2360_v56  ;;  %vm2193_vm6 = vmpackc.low %vm578_vm5, %vm3649_vm12  ;;  %vm3650_vm14 = vcmp.eq.s32.totalorder %v2522_v58, %v2517_v57  ;;  %vm3651_vm5 = vcmp.eq.s32.totalorder %v2525_v59, %v2517_v57  ;;  %v3175_v58 = vadd.s32 360, %v2469_v44  ;;  %v3204_v59 = vadd.s32 368, %v2469_v44 }
 0x121   : > { %2194 = vmatprep.subr.msk.bf16.mxu1 %vm2193_vm6, %v2360_v56  ;;  %vm2063_vm12 = vmpackc.low %vm3651_vm5, %vm3650_vm14  ;;  %vm3652_vm6 = vcmp.eq.s32.totalorder %v2783_v38, %v2497_v52  ;;  %vm499_vm14 = vcmp.eq.s32.totalorder %v2634_v14, %v2489_v47  ;;  %vm501_vm9 = vcmp.eq.s32.totalorder %v2646_v17, %v2517_v57 }
 0x122   : > { %vm2195_vm4 = vmpackc.low %vm530_vm11, %vm3652_vm6  ;;  %vm548_vm6 = vcmp.eq.s32.totalorder %v3175_v58, %v2497_v52 }
 0x123   : > { %2064 = vmatpush1.bf16.msk.msra.mxu0 %vm2063_vm12, %v2360_v56  ;;  %vm2065_vm11 = vmpackc.low %vm481_vm15, %vm478_vm13  ;;  %vm3653_vm12 = vcmp.eq.s32.totalorder %v2802_v42, %v2497_v52  ;;  %vm493_vm13 = vcmp.eq.s32.totalorder %v2607_v10, %v2489_v47 }
 0x124   : > { %2196 = vmatpush3.bf16.msk.msra.mxu1 %vm2195_vm4, %v2360_v56  ;;  %2066 = vmatprep.subr.msk.bf16.mxu0 %vm2065_vm11, %v2360_v56  ;;  %vm2197_vm15 = vmpackc.low %vm584_vm10, %vm3653_vm12  ;;  %vm3654_vm11 = vcmp.eq.s32.totalorder %v2548_v62, %v2517_v57  ;;  %vm3655_vm10 = vcmp.eq.s32.totalorder %v2551_v63, %v2517_v57  ;;  %vm3657_vm4 = vcmp.eq.s32.totalorder %v2576_v4, %v2489_v47  ;;  %v3207_v62 = vadd.s32 376, %v2469_v44 }
 0x125   : > { %2198 = vmatprep.subr.msk.bf16.mxu1 %vm2197_vm15, %v2360_v56  ;;  %vm2067_vm12 = vmpackc.low %vm3655_vm10, %vm3654_vm11  ;;  %vm3656_vm15 = vcmp.eq.s32.totalorder %v2832_v50, %v2497_v52  ;;  %vm490_vm10 = vcmp.eq.s32.totalorder %v2604_v8, %v2489_v47  ;;  %vm593_vm11 = vcmp.eq.s32.totalorder %v2917_v60, %v2497_v52 }
 0x126   : > { %vm2199_vm5 = vmpackc.low %vm3656_vm15, %vm533_vm3  ;;  %vm542_vm15 = vcmp.eq.s32.totalorder %v3096_v48, %v2497_v52 }
 0x127   : > { %2068 = vmatpush1.bf16.msk.msra.mxu0 %vm2067_vm12, %v2360_v56  ;;  %vm2069_vm3 = vmpackc.low %vm487_vm1, %vm3657_vm4  ;;  %vm3658_vm12 = vcmp.eq.s32.totalorder %v2835_v51, %v2497_v52  ;;  %vm3659_vm1 = vcmp.eq.s32.totalorder %v2850_v53, %v2497_v52 }
 0x128   : > { %2200 = vmatpush3.bf16.msk.msra.mxu1 %vm2199_vm5, %v2360_v56  ;;  %2070 = vmatprep.subr.msk.bf16.mxu0 %vm2069_vm3, %v2360_v56  ;;  %vm2201_vm4 = vmpackc.low %vm3659_vm1, %vm3658_vm12  ;;  %vm3660_vm5 = vcmp.eq.s32.totalorder %v2576_v4, %v2517_v57  ;;  %vm3661_vm3 = vcmp.eq.s32.totalorder %v2579_v5, %v2517_v57  ;;  %vm596_vm12 = vcmp.eq.s32.totalorder %v2933_v61, %v2497_v52  ;;  %v3678_v5 = vmov 0 }
 0x129   : > { %2202 = vmatprep.subr.msk.bf16.mxu1 %vm2201_vm4, %v2360_v56  ;;  %vm2071_vm7 = vmpackc.low %vm3661_vm3, %vm3660_vm5  ;;  %vm489_vm4 = vcmp.eq.s32.totalorder %v2604_v8, %v2517_v57  ;;  %vm492_vm5 = vcmp.eq.s32.totalorder %v2607_v10, %v2517_v57  ;;  %v3687_v8 = vmov 0 }
 0x12a   : > { %vm2203_vm1 = vmpackc.low %vm542_vm15, %vm539_vm2  ;;  %vm496_vm15 = vcmp.eq.s32.totalorder %v2625_v13, %v2489_v47 }
 0x12b   : > { %2072 = vmatpush1.bf16.msk.msra.mxu0 %vm2071_vm7, %v2360_v56  ;;  %vm2073_vm3 = vmpackc.low %vm493_vm13, %vm490_vm10  ;;  %vm599_vm13 = vcmp.eq.s32.totalorder %v2980_v41, %v2497_v52  ;;  %vm602_vm10 = vcmp.eq.s32.totalorder %v3035_v46, %v2497_v52 }
 0x12c   : > { %2204 = vmatpush3.bf16.msk.msra.mxu1 %vm2203_vm1, %v2360_v56  ;;  %2074 = vmatprep.subr.msk.bf16.mxu0 %vm2073_vm3, %v2360_v56  ;;  %vm2205_vm2 = vmpackc.low %vm596_vm12, %vm593_vm11  ;;  %vm495_vm12 = vcmp.eq.s32.totalorder %v2625_v13, %v2517_v57  ;;  %vm498_vm1 = vcmp.eq.s32.totalorder %v2634_v14, %v2517_v57  ;;  %vm554_vm3 = vcmp.eq.s32.totalorder %v3207_v62, %v2497_v52 }
 0x12d   : > { %2206 = vmatprep.subr.msk.bf16.mxu1 %vm2205_vm2, %v2360_v56  ;;  %vm2075_vm7 = vmpackc.low %vm492_vm5, %vm489_vm4  ;;  %vm551_vm5 = vcmp.eq.s32.totalorder %v3204_v59, %v2497_v52  ;;  %vm505_vm2 = vcmp.eq.s32.totalorder %v2659_v20, %v2489_v47  ;;  %v2361_v52 = vmov 0.0  }
 0x12e   : > { %vm2207_vm11 = vmpackc.low %vm548_vm6, %vm545_vm0  ;;  %vm502_vm6 = vcmp.eq.s32.totalorder %v2646_v17, %v2489_v47  ;;  %v3715_v17 = vmov 0 }
 0x12f   : > { %2076 = vmatpush1.bf16.msk.msra.mxu0 %vm2075_vm7, %v2360_v56  ;;  %vm2077_vm4 = vmpackc.low %vm499_vm14, %vm496_vm15 }
 0x130   : > { %2208 = vmatpush3.bf16.msk.msra.mxu1 %vm2207_vm11, %v2360_v56  ;;  %2078 = vmatprep.subr.msk.bf16.mxu0 %vm2077_vm4, %v2360_v56  ;;  %vm2209_vm0 = vmpackc.low %vm602_vm10, %vm599_vm13  ;;  %vm504_vm11 = vcmp.eq.s32.totalorder %v2659_v20, %v2517_v57  ;;  %vm508_vm13 = vcmp.eq.s32.totalorder %v2689_v26, %v2489_v47  ;;  %vm511_vm10 = vcmp.eq.s32.totalorder %v2700_v27, %v2489_v47  ;;  %v3719_v20 = vmov 0 }
 0x131   : > { %2210 = vmatprep.subr.msk.bf16.mxu1 %vm2209_vm0, %v2360_v56  ;;  %vm2079_vm14 = vmpackc.low %vm498_vm1, %vm495_vm12  ;;  %vm507_vm4 = vcmp.eq.s32.totalorder %v2689_v26, %v2517_v57  ;;  %vm517_vm0 = vcmp.eq.s32.totalorder %v2732_v30, %v2489_v47 }
 0x132   : > { %vm2211_vm15 = vmpackc.low %vm554_vm3, %vm551_vm5  ;;  %vm510_vm5 = vcmp.eq.s32.totalorder %v2700_v27, %v2517_v57  ;;  %vm514_vm3 = vcmp.eq.s32.totalorder %v2720_v23, %v2489_v47 }
 0x133   : > { %2080 = vmatpush1.bf16.msk.msra.mxu0 %vm2079_vm14, %v2360_v56  ;;  %vm2081_vm7 = vmpackc.low %vm505_vm2, %vm502_vm6  ;;  %vm513_vm2 = vcmp.eq.s32.totalorder %v2720_v23, %v2517_v57  ;;  %vm516_vm14 = vcmp.eq.s32.totalorder %v2732_v30, %v2517_v57 }
 0x134   : > { %2212 = vmatpush3.bf16.msk.msra.mxu1 %vm2211_vm15, %v2360_v56  ;;  %2082 = vmatprep.subr.msk.bf16.mxu0 %vm2081_vm7, %v2360_v56  ;;  %vm2083_vm12 = vmpackc.low %vm504_vm11, %vm501_vm9  ;;  %vm2362_vm9 = vmmov 0   ;;  %vm1339_vm15 = vcmask 23552   ;;  %vm520_vm11 = vcmp.eq.s32.totalorder %v2749_v33, %v2489_v47 }
 0x135   : > { %2016 = vmatprep.subr.mxu1 %v2361_v52  ;;  %vm2085_vm1 = vmpackc.low %vm511_vm10, %vm508_vm13  ;;  %vm523_vm13 = vcmp.eq.s32.totalorder %v2762_v34, %v2489_v47  ;;  %vm519_vm10 = vcmp.eq.s32.totalorder %v2749_v33, %v2517_v57 }
 0x136   : > { %vm2087_vm6 = vmpackc.low %vm510_vm5, %vm507_vm4  ;;  %vm526_vm4 = vcmp.eq.s32.totalorder %v2783_v38, %v2489_v47  ;;  %vm529_vm5 = vcmp.eq.s32.totalorder %v2799_v40, %v2489_v47 }
 0x137   : > { %1270 = vmatmul.mubr.f32.vlgmr.msra.gmra.mrb[2].mxu1 %v2792_v39  ;;  %2084 = vmatpush1.bf16.msk.msra.mxu0 %vm2083_vm12, %v2360_v56  ;;  %vm2089_vm7 = vmpackc.low %vm517_vm0, %vm514_vm3  ;;  %vm522_vm12 = vcmp.eq.s32.totalorder %v2762_v34, %v2517_v57  ;;  %vm525_vm0 = vcmp.eq.s32.totalorder %v2783_v38, %v2517_v57 }
 0x138   : > { %2086 = vmatprep.subr.msk.bf16.mxu0 %vm2085_vm1, %v2360_v56  ;;  %2018 = vmatprep.mubr.msk.f32.mxu1 %vm2362_vm9, %v2361_v52  ;;  %vm2091_vm1 = vmpackc.low %vm516_vm14, %vm513_vm2  ;;  %vm528_vm9 = vcmp.eq.s32.totalorder %v2799_v40, %v2517_v57  ;;  %vm532_vm2 = vcmp.eq.s32.totalorder %v2818_v45, %v2489_v47  ;;  %vm535_vm14 = vcmp.eq.s32.totalorder %v2832_v50, %v2489_v47 }
 0x139   : > { %vm2093_vm3 = vmpackc.low %vm523_vm13, %vm520_vm11  ;;  %vm531_vm11 = vcmp.eq.s32.totalorder %v2818_v45, %v2517_v57  ;;  %vm534_vm13 = vcmp.eq.s32.totalorder %v2832_v50, %v2517_v57 }
 0x13a   : > { %1058 = vmatmul.mubr.f32.vlgmr.msra.gmra.mrb[0].mxu0 %v2456_v19 }
 0x13b   : > { %2088 = vmatpush1.bf16.msk.msra.mxu0 %vm2087_vm6, %v2360_v56  ;;  %1128 = vmatprep.mubr.f32.mxu0 %v2854_v54  ;;  %vm2095_vm6 = vmpackc.low %vm522_vm12, %vm519_vm10  ;;  %vm538_vm10 = vcmp.eq.s32.totalorder %v2900_v55, %v2489_v47  ;;  %vm541_vm12 = vcmp.eq.s32.totalorder %v3096_v48, %v2489_v47 }
 0x13c   : > { %2090 = vmatprep.subr.msk.bf16.mxu0 %vm2089_vm7, %v2360_v56  ;;  %vm2097_vm7 = vmpackc.low %vm529_vm5, %vm526_vm4 }
 0x13d   : > { %2017 = vmatpush3.xpose.msk.msra.mxu1 %vm1339_vm15, %v2444_v18  ;;  %vm3293_vm4 = vmpackc.low %vm535_vm14, %vm532_vm2  ;;  %vm3670_vm2 = vcmp.eq.s32.totalorder %v2677_v24, %v2489_v47  ;;  %vm3671_vm14 = vcmp.eq.s32.totalorder %v2686_v25, %v2489_v47 }
 0x13e   : > { %vm3298_vm5 = vmpackc.low %vm534_vm13, %vm531_vm11  ;;  %vm3676_vm13 = vcmp.eq.s32.totalorder %v2677_v24, %v2517_v57  ;;  %v3731_v24 = vmov 0 }
 0x13f   : > { %2092 = vmatpush1.bf16.msk.msra.mxu0 %vm2091_vm1, %v2360_v56  ;;  %vm3285_vm1 = vmpackc.low %vm528_vm9, %vm525_vm0  ;;  %vm544_vm9 = vcmp.eq.s32.totalorder %v3172_v49, %v2489_v47 }
 0x140   : > { %2094 = vmatprep.subr.msk.bf16.mxu0 %vm2093_vm3, %v2360_v56  ;;  %2019 = vmatmul.mubr.msk.f32.vlgmr.msra.gmra.mrb[4].mxu1 %vm1339_vm15, %v2444_v18  ;;  %vm537_vm15 = vcmp.eq.s32.totalorder %v2900_v55, %v2517_v57  ;;  %vm540_vm3 = vcmp.eq.s32.totalorder %v3096_v48, %v2517_v57  ;;  %vm3307_vm0 = vmpackc.low %vm541_vm12, %vm538_vm10  ;;  %vm3677_vm10 = vcmp.eq.s32.totalorder %v2686_v25, %v2517_v57 }
 0x141   : > { %vm3321_vm11 = vmpackc.low %vm3671_vm14, %vm3670_vm2  ;;  %vm3682_vm14 = vcmp.eq.s32.totalorder %v2703_v28, %v2489_v47 }
 0x142   : > { %vm3335_vm12 = vmpackc.low %vm3677_vm10, %vm3676_vm13  ;;  %vm3683_vm13 = vcmp.eq.s32.totalorder %v2717_v29, %v2489_v47 }
 0x143   : > { %2096 = vmatpush1.bf16.msk.msra.mxu0 %vm2095_vm6, %v2360_v56  ;;  %vm547_vm6 = vcmp.eq.s32.totalorder %v3175_v58, %v2489_v47  ;;  %v3679_v5 = vsel %vm3335_vm12, 4294967295, %v3678_v5  ;;  %vm3356_vm10 = vmpackc.low %vm3683_vm13, %vm3682_vm14  ;;  %vm3689_vm13 = vcmp.eq.s32.totalorder %v2735_v31, %v2489_v47 }
 0x144   : > { %2098 = vmatprep.subr.msk.bf16.mxu0 %vm2097_vm7, %v2360_v56  ;;  %vm3325_vm7 = vmpackc.low %vm540_vm3, %vm537_vm15  ;;  %vm543_vm15 = vcmp.eq.s32.totalorder %v3172_v49, %v2517_v57  ;;  %vm546_vm3 = vcmp.eq.s32.totalorder %v3175_v58, %v2517_v57  ;;  %v3685_v7 = vsel %vm3356_vm10, 4294967295, %v3684_v7 }
 0x145   : > { %vm3342_vm2 = vmpackc.low %vm547_vm6, %vm544_vm9  ;;  %vm553_vm9 = vcmp.eq.s32.totalorder %v3207_v62, %v2489_v47  ;;  %vm3686_vm6 = vcmp.eq.s32.totalorder %v2717_v29, %v2517_v57 }
 0x146   : > { %vm3373_vm14 = vmpackc.low %vm3686_vm6, %vm561_vm8  ;;  %vm3695_vm8 = vcmp.eq.s32.totalorder %v2735_v31, %v2517_v57  ;;  %vm3696_vm6 = vcmp.eq.s32.totalorder %v2746_v32, %v2517_v57 }
 0x147   : > { %2100 = vmatpush1.bf16.msk.msra.mxu0 %vm3285_vm1, %v2360_v56  ;;  %vm550_vm1 = vcmp.eq.s32.totalorder %v3204_v59, %v2489_v47  ;;  %v3688_v8 = vsel %vm3373_vm14, 4294967295, %v3687_v8  ;;  %vm3387_vm12 = vmpackc.low %vm546_vm3, %vm543_vm15  ;;  %vm3701_vm15 = vcmp.eq.s32.totalorder %v2765_v35, %v2489_v47  ;;  %vm3702_vm3 = vcmp.eq.s32.totalorder %v2780_v37, %v2489_v47 }
 0x148   : > { %2102 = vmatprep.subr.msk.bf16.mxu0 %vm3293_vm4, %v2360_v56  ;;  %vm3690_vm4 = vcmp.eq.s32.totalorder %v2746_v32, %v2489_v47  ;;  %vm3397_vm14 = vmpackc.low %vm3696_vm6, %vm3695_vm8  ;;  %vm3709_vm8 = vcmp.eq.s32.totalorder %v2802_v42, %v2489_v47  ;;  %vm3710_vm6 = vcmp.eq.s32.totalorder %v2815_v43, %v2489_v47 }
 0x149   : > { %vm3383_vm10 = vmpackc.low %vm3690_vm4, %vm3689_vm13 }
 0x14a   : > { %vm3404_vm13 = vmpackc.low %vm553_vm9, %vm550_vm1  ;;  %vm3706_vm1 = vcmp.eq.s32.totalorder %v2780_v37, %v2517_v57 }
 0x14b   : > { %2104 = vmatpush1.bf16.msk.msra.mxu0 %vm3298_vm5, %v2360_v56  ;;  %vm3414_vm4 = vmpackc.low %vm3702_vm3, %vm3701_vm15  ;;  %vm3705_vm5 = vcmp.eq.s32.totalorder %v2765_v35, %v2517_v57  ;;  %vm3714_vm3 = vcmp.eq.s32.totalorder %v2815_v43, %v2517_v57 }
 0x14c   : > { %2106 = vmatprep.subr.msk.bf16.mxu0 %vm3307_vm0, %v2360_v56  ;;  %vm3427_vm9 = vmpackc.low %vm3706_vm1, %vm3705_vm5  ;;  %vm3713_vm0 = vcmp.eq.s32.totalorder %v2802_v42, %v2517_v57  ;;  %vm3717_vm1 = vcmp.eq.s32.totalorder %v2835_v51, %v2489_v47 }
 0x14d   : > { %vm3437_vm15 = vmpackc.low %vm3710_vm6, %vm3709_vm8  ;;  %vm3718_vm8 = vcmp.eq.s32.totalorder %v2850_v53, %v2489_v47 }
 0x14e   : > { %vm3447_vm5 = vmpackc.low %vm3714_vm3, %vm3713_vm0  ;;  %vm3721_vm0 = vcmp.eq.s32.totalorder %v2835_v51, %v2517_v57 }
 0x14f   : > { %v3716_v17 = vsel %vm3447_vm5, 4294967295, %v3715_v17  ;;  %2108 = vmatpush1.bf16.msk.msra.mxu0 %vm3325_vm7, %v2360_v56  ;;  %vm3460_vm6 = vmpackc.low %vm3718_vm8, %vm3717_vm1  ;;  %vm3722_vm7 = vcmp.eq.s32.totalorder %v2850_v53, %v2517_v57  ;;  %vm3725_vm1 = vcmp.eq.s32.totalorder %v2917_v60, %v2489_v47  ;;  %vm3726_vm8 = vcmp.eq.s32.totalorder %v2933_v61, %v2489_v47 }
 0x150   : > { %v3720_v20 = vsel %vm3460_vm6, 4294967295, %v3719_v20  ;;  %2110 = vmatprep.subr.msk.bf16.mxu0 %vm3342_vm2, %v2360_v56  ;;  %vm3473_vm3 = vmpackc.low %vm3722_vm7, %vm3721_vm0  ;;  %vm3729_vm2 = vcmp.eq.s32.totalorder %v2917_v60, %v2517_v57  ;;  %vm3730_vm5 = vcmp.eq.s32.totalorder %v2933_v61, %v2517_v57  ;;  %vm549_vm7 = vcmp.eq.s32.totalorder %v3204_v59, %v2517_v57 }
 0x151   : > { %v3724_v21 = vsel %vm3473_vm3, 4294967295, %v3723_v21  ;;  %vm3483_vm6 = vmpackc.low %vm3726_vm8, %vm3725_vm1  ;;  %vm552_vm1 = vcmp.eq.s32.totalorder %v3207_v62, %v2517_v57  ;;  %vm3733_vm8 = vcmp.eq.s32.totalorder %v2980_v41, %v2489_v47 }
 0x152   : > { %v3728_v22 = vsel %vm3483_vm6, 4294967295, %v3727_v22  ;;  %vm3493_vm0 = vmpackc.low %vm3730_vm5, %vm3729_vm2  ;;  %vm3734_vm6 = vcmp.eq.s32.totalorder %v3035_v46, %v2489_v47  ;;  %vm3738_vm2 = vcmp.eq.s32.totalorder %v3035_v46, %v2517_v57 }
 0x153   : > { %v3732_v24 = vsel %vm3493_vm0, 4294967295, %v3731_v24  ;;  %2112 = vmatpush1.bf16.msk.msra.mxu0 %vm3387_vm12, %v2360_v56  ;;  %vm3510_vm5 = vmpackc.low %vm3734_vm6, %vm3733_vm8  ;;  %vm3737_vm12 = vcmp.eq.s32.totalorder %v2980_v41, %v2517_v57  ;;  %vm3742_vm6 = vnez %v3685_v7  ;;  %vm3743_vm8 = vnez %v3688_v8 }
 0x154   : > { %2114 = vmatprep.subr.msk.bf16.mxu0 %vm3404_vm13, %v2360_v56  ;;  %vm3523_vm0 = vmpackc.low %vm3738_vm2, %vm3737_vm12  ;;  %vm3741_vm13 = vnez %v3679_v5 }
 0x155   : > { %vm2115_vm3 = vmpackc.low %vm552_vm1, %vm549_vm7 }
 0x157   : > { %2116 = vmatpush1.bf16.msk.msra.mxu0 %vm2115_vm3, %v2360_v56  ;;  %vm3750_vm3 = vcmask 1042432  }
 0x158   : > { %2118 = vmatprep.subr.msk.bf16.mxu0 %vm3321_vm11, %v2360_v56  ;;  %vm3744_vm11 = vnez %v3716_v17 }
 0x15b   : > { %2120 = vmatpush1.bf16.msk.msra.mxu0 %vm3741_vm13, %v2360_v56 }
 0x15c   : > { %2122 = vmatprep.subr.msk.bf16.mxu0 %vm3742_vm6, %v2360_v56 }
 0x15f   : > { %2124 = vmatpush1.bf16.msk.msra.mxu0 %vm3743_vm8, %v2360_v56 }
 0x160   : > { %2126 = vmatprep.subr.msk.bf16.mxu0 %vm3383_vm10, %v2360_v56  ;;  %vm3745_vm10 = vnez %v3720_v20 }
 0x163   : > { %2128 = vmatpush1.bf16.msk.msra.mxu0 %vm3397_vm14, %v2360_v56  ;;  %vm3746_vm14 = vnez %v3724_v21 }
 0x164   : > { %2130 = vmatprep.subr.msk.bf16.mxu0 %vm3414_vm4, %v2360_v56  ;;  %vm3747_vm4 = vnez %v3728_v22 }
 0x167   : > { %2132 = vmatpush1.bf16.msk.msra.mxu0 %vm3427_vm9, %v2360_v56  ;;  %vm3748_vm9 = vnez %v3732_v24 }
 0x168   : > { %2134 = vmatprep.subr.msk.bf16.mxu0 %vm3437_vm15, %v2360_v56  ;;  %vm3749_vm15 = vcmask 18432  }
 0x16b   : > { %2136 = vmatpush1.bf16.msk.msra.mxu0 %vm3744_vm11, %v2360_v56 }
 0x16c   : > { %2138 = vmatprep.subr.msk.bf16.mxu0 %vm3745_vm10, %v2360_v56 }
 0x16f   : > { %2140 = vmatpush1.bf16.msk.msra.mxu0 %vm3746_vm14, %v2360_v56  ;;  %vm1436_vm14 = vcmp.eq.s32.totalorder %v2469_v44, 0 }
 0x170   : > { %2142 = vmatprep.subr.msk.bf16.mxu0 %vm3747_vm4, %v2360_v56 }
 0x173   : > { %2144 = vmatpush1.bf16.msk.msra.mxu0 %vm3748_vm9, %v2360_v56 }
 0x174   : > { %2146 = vmatprep.subr.msk.bf16.mxu0 %vm3510_vm5, %v2360_v56  ;;  %vm1323_vm5 = vcmask 1040384  }
 0x177   : > { %2148 = vmatpush1.bf16.msk.msra.mxu0 %vm3523_vm0, %v2360_v56  ;;  %vm3751_vm0 = vmmov %vm3750_vm3 }
 0x178   : > { %vm3752_vm7 = vmmov %vm3751_vm0 }
 0x17a   : > { %1129 = vmatmul.mubr.f32.vlgmr.msra.gmra.mrb[0].mxu0 %v2792_v39 }
 0x1ea   : > { %v1976_v47 = vpop.f32.mrb[0].mxu1 }
 0x1eb   : > { %v1977_v57 = vpop.f32.mrb[1].mxu1 }
 0x1ec   : > { %v1978_v27 = vadd.f32 %v1977_v57, %v1976_v47 }
 0x20a   : > { %v2011_v28 = vpop.f32.mrb[2].mxu1 }
 0x20b   : > { %v2012_v29 = vpop.f32.mrb[3].mxu1 }
 0x20c   : > { %v2013_v23 = vadd.f32 %v2012_v29, %v2011_v28 }
 0x20e   : > { %v1272_v30 = vadd.f32 %v2013_v23, %v1978_v27 }
 0x210   : > { %v1277_v35 = vsub.f32 %v2474_v2, %v1272_v30 }
 0x212   : > { %v1280_v37 = vmul.f32 %v1277_v35, %v1277_v35 }
 0x213   : > { %v1408_v31 = vpop.f32.mrb[4].mxu1 }
 0x214   : > { %v1412_v32 = vmul.f32 %v1408_v31, %v1408_v31  ;;  %v2020_v33 = vpop.f32.mrb[5].mxu1  ;;  %v1295_v56 = vsel %vm3750_vm3, %v1280_v37, 0.0 }
 0x215   : > { %v1296_v38 = vrot.slane %v1295_v56, 4 }
 0x216   : > { %v1413_v34 = vsel %vm3749_vm15, %v1412_v32, 0.0 }
 0x217   : > { %1414 = vadd.xlane.f32.xlu0 %v1413_v34  ;;  %v1297_v39 = vadd.f32 %v1296_v38, %v1295_v56 }
 0x219   : > { %v1298_v40 = vrot.slane %v1297_v39, 2 }
 0x21b   : > { %v1299_v43 = vadd.f32 %v1298_v40, %v1297_v39 }
 0x21d   : > { %v1300_v55 = vrot.slane %v1299_v43, 1 }
 0x21f   : > { %v1301_v48 = vadd.f32 %v1300_v55, %v1299_v43  ;;  %v1435_v43 = vand.u32 127, %v282_v36 }
 0x221   : > { %2285 = vrsqrt.f32 %v1301_v48  ;;  %vm1318_vm1 = vcmp.eq.f32.partialorder %v1301_v48, inf  ;;  %v1321_v6 = vand.u32 2147483648, %v1301_v48  ;;  %vm1320_vm8 = vcmp.eq.f32.partialorder %v1301_v48, 0.0 }
 0x222   : > { %vm1439_vm4 = vcmp.eq.s32.totalorder %v1435_v43, 1  ;;  %vm1437_vm9 = vcmp.eq.s32.totalorder %v1435_v43, 0 }
 0x223   : > { %vm1440_vm15 = vmand %vm1436_vm14, %vm1439_vm4 }
 0x224   : > { %vm1438_vm3 = vmand %vm1436_vm14, %vm1437_vm9 }
 0x22b   : > { %v2286_v0 = vpop.eup %2285 }
 0x22c   : > { %v1317_v18 = vmul.f32 %v2286_v0, %v1301_v48 }
 0x22e   : > { %v1319_v10 = vsel %vm1318_vm1, %v1301_v48, %v1317_v18 }
 0x22f   : > { %v1322_v16 = vsel %vm1320_vm8, %v1321_v6, %v1319_v10 }
 0x230   : > { %v1327_v22 = vsel %vm1323_vm5, %v1322_v16, 0.0 }
 0x24d   : > { %v1130_v42 = vpop.f32.mrb[0].mxu0 }
 0x24e   : > { %v1275_v45 = vsub.f32 %v2478_v9, %v1130_v42  ;;  %v1132_v50 = vpop.f32.mrb[1].mxu0 }
 0x24f   : > { %v1276_v51 = vsub.f32 %v2472_v1, %v1132_v50 }
 0x250   : > { %v1278_v53 = vmul.f32 %v1275_v45, %v1275_v45 }
 0x251   : > { %v1279_v54 = vmul.f32 %v1276_v51, %v1276_v51 }
 0x252   : > { %v1281_v60 = vsel %vm3751_vm0, %v1278_v53, 0.0 }
 0x253   : > { %v1282_v61 = vrot.slane %v1281_v60, 4  ;;  %v1288_v2 = vsel %vm3752_vm7, %v1279_v54, 0.0 }
 0x254   : > { %v1289_v41 = vrot.slane %v1288_v2, 4 }
 0x255   : > { %v1283_v46 = vadd.f32 %v1282_v61, %v1281_v60 }
 0x256   : > { %v1290_v49 = vadd.f32 %v1289_v41, %v1288_v2 }
 0x257   : > { %v1284_v58 = vrot.slane %v1283_v46, 2 }
 0x258   : > { %v1291_v59 = vrot.slane %v1290_v49, 2 }
 0x259   : > { %v1285_v62 = vadd.f32 %v1284_v58, %v1283_v46 }
 0x25a   : > { %v1292_v52 = vadd.f32 %v1291_v59, %v1290_v49 }
 0x25b   : > { %v1286_v9 = vrot.slane %v1285_v62, 1 }
 0x25c   : > { %v1293_v19 = vrot.slane %v1292_v52, 1 }
 0x25d   : > { %v1287_v1 = vadd.f32 %v1286_v9, %v1285_v62 }
 0x25e   : > { %v1294_v63 = vadd.f32 %v1293_v19, %v1292_v52 }
 0x25f   : > { %2287 = vrsqrt.f32 %v1287_v1  ;;  %vm1304_vm12 = vcmp.eq.f32.partialorder %v1287_v1, inf  ;;  %v1307_v7 = vand.u32 2147483648, %v1287_v1  ;;  %vm1306_vm2 = vcmp.eq.f32.partialorder %v1287_v1, 0.0 }
 0x260   : > { %2289 = vrsqrt.f32 %v1294_v63  ;;  %vm1311_vm13 = vcmp.eq.f32.partialorder %v1294_v63, inf  ;;  %v1314_v12 = vand.u32 2147483648, %v1294_v63  ;;  %vm1313_vm6 = vcmp.eq.f32.partialorder %v1294_v63, 0.0 }
 0x269   : > { %v2288_v3 = vpop.eup %2287 }
 0x26a   : > { %v2290_v4 = vpop.eup %2289  ;;  %v1303_v5 = vmul.f32 %v2288_v3, %v1287_v1 }
 0x26b   : > { %v1310_v8 = vmul.f32 %v2290_v4, %v1294_v63 }
 0x26c   : > { %v1305_v11 = vsel %vm1304_vm12, %v1287_v1, %v1303_v5 }
 0x26d   : > { %v1308_v13 = vsel %vm1306_vm2, %v1307_v7, %v1305_v11  ;;  %v1312_v14 = vsel %vm1311_vm13, %v1294_v63, %v1310_v8 }
 0x26e   : > { %v1315_v15 = vsel %vm1313_vm6, %v1314_v12, %v1312_v14  ;;  %v1324_v17 = vsel %vm1323_vm5, %v1308_v13, 0.0 }
 0x26f   : > { %v1325_v20 = vsel %vm1323_vm5, %v1315_v15, 0.0 }
 0x270   : > { %v1326_v21 = vadd.f32 %v1325_v20, %v1324_v17 }
 0x272   : > { %v1328_v24 = vadd.f32 %v1327_v22, %v1326_v21 }
 0x274   : > { %1329 = vadd.xlane.f32.xlu1 %v1328_v24 }
 0x2a4   : > { %v1415_v25 = vpop.xlane.xlu0 %1414 }
 0x2a5   : > { %v1416_v26 = vrot.slane %v1415_v25, 4 }
 0x2a7   : > { %v1417_v47 = vadd.f32 %v1416_v26, %v1415_v25 }
 0x2a9   : > { %v1418_v57 = vrot.slane %v1417_v47, 2 }
 0x2ab   : > { %v1419_v23 = vadd.f32 %v1418_v57, %v1417_v47 }
 0x2ad   : > { %v1420_v32 = vrot.slane %v1419_v23, 1 }
 0x2af   : > { %v1421_v35 = vadd.f32 %v1420_v32, %v1419_v23 }
 0x301   : > { %v1330_v27 = vpop.xlane.xlu1 %1329 }
 0x302   : > { %v1331_v28 = vrot.slane %v1330_v27, 4 }
 0x304   : > { %v1332_v29 = vadd.f32 %v1331_v28, %v1330_v27 }
 0x306   : > { %v1333_v30 = vrot.slane %v1332_v29, 2 }
 0x308   : > { %v1334_v31 = vadd.f32 %v1333_v30, %v1332_v29 }
 0x30a   : > { %v1335_v33 = vrot.slane %v1334_v31, 1 }
 0x30c   : > { %v1336_v34 = vadd.f32 %v1335_v33, %v1334_v31 }
 0x30e   : > { %2221 = vpush %v1336_v34 }
 0x30f   : > { %2223 = vpush %v1421_v35 }
 0x33f   : > { %s3587_s9 = spop %2221 }
 0x340   : > { %s2224_s10 = spop %2223  ;;  %s1338_s25 = smul.f32 0.0078125, %s3587_s9 }
 0x341   : > { %s1938_s11 = sadd.f32 -3.0, %s2224_s10  ;;  %s2299_s9 = scalar_lea.vmem %s2298_s8, 256 }
 0x342   : > { %v1443_v50 = vstv %s1338_s25  ;;  %p2301_p1 = scmp.lt.s32.totalorder %s2299_s9, %s2293_s6 }
 0x343   : > { %s1424_s19 = smax.f32 %s2363_s17, %s1938_s11 }
 0x344   : > { %v1425_v37 = vstv %s1424_s19  ;;  %p2302_p2 = por %p2301_p1, %p2300_p0 }
 0x345   : > { %2291 = vrsqrt.f32 %v1425_v37  ;;  %vm1428_vm11 = vcmp.eq.f32.partialorder %v1425_v37, inf  ;;  %v1431_v39 = vand.u32 2147483648, %v1425_v37  ;;  %vm1430_vm10 = vcmp.eq.f32.partialorder %v1425_v37, 0.0 }
 0x346   : > { %p2303_p3 = pnand %p2302_p2, %p2296_p13 }
 0x34f   : > { %v2292_v56 = vpop.eup %2291 }
 0x350   : > { %v1427_v38 = vmul.f32 %v2292_v56, %v1425_v37 }
 0x352   : > { %v1429_v40 = vsel %vm1428_vm11, %v1425_v37, %v1427_v38 }
 0x353   : > { %v1432_v42 = vsel %vm1430_vm10, %v1431_v39, %v1429_v40 }
 0x354   : > { %2225 = vpush %v1432_v42 }
 0x385   : > { %s2226_s29 = spop %2225 }
 0x386   : > { %v1441_v45 = vstv %s2226_s29 }
 0x387   : > { %v1442_v51 = vsel %vm1440_vm15, %v1441_v45, 0.0 }
 0x388   : > { %v1444_v36 = vsel %vm1438_vm3, %v1443_v50, %v1442_v51 }
 0x389   : > { %1445 = vst [vmem:[%s189_s27] sm:$0xff] %v1444_v36 }
 0x38a   : > { %2306 = shalt.err (!%p2303_p3)
}
 0x38b   : > { %s2307_s10 = scalar_lea.hbm %s3597_s5, 128  ;;  %s2311_s19 = scalar_lea.hbm %s3642_s3, 256 }
 0x38c   : > { %p2308_p4 = scmp.ne.s32.totalorder %s3597_s5, %s2307_s10  ;;  %p2312_p9 = scmp.lt.u32.totalorder %s3597_s5, %s3642_s3 }
 0x38d   : > { %p2313_p10 = scmp.lt.u32.totalorder %s2311_s19, %s2307_s10  ;;  %p2315_p12 = scmp.lt.u32.totalorder %s2307_s10, %s3597_s5 }
 0x38e   : > { %p2309_p7 = pnand %p2308_p4, %p2423_p5 }
 0x38f   : > { %p2314_p11 = por %p2313_p10, %p2312_p9 }
 0x390   : > { %p2310_p8 = pneg %p2309_p7 }
 0x391   : > { %p2316_p13 = por %p2315_p12, %p2314_p11 }
 0x393   : > { %p2317_p0 = pnand %p2316_p13, %p2310_p8 }
 0x395   : > { %2320 = shalt.err (!%p2317_p0)
}
 0x396   : > { %2227 = dma.vmem_to_hbm [thread:$0]  (%p2423_p5), %s3599_s28, 128, %s3597_s5, %s1447_s16  }
 0x397 PF: > { %p2233_p1 = scmp.ge.s32.totalorder %s2355_s15, 2  ;;  %s1472_s25 = sand.u32 1, %s2343_s12  }
 0x398   : > { %s1473_s26 = scalar_lea.sflag [#allocation3], %s1472_s25 }
 0x399   : > { %p2230_p2 = pnand %p2233_p1, %p2427_p6 }
 0x39b   : > { %2338 = dma.done.wait (!%p2230_p2), %s1473_s26, 128  }
 0x39c   : > { %2340 = vsyncadd (!%p2230_p2), %s1473_s26, 4294967168  ;;  %p13_p3 = scmp.ge.s32.totalorder %s2410_s18, 4   ;;  %s3753_s12 = smov %s2347_s13 }
 0x39d   : > { %s3754_s13 = smov %s2351_s14  ;;  %s3755_s14 = smov %s2421_s21 }
 0x39e   : > { %s3756_s15 = smov %s2410_s18  ;;  %15 = sbr.rel (!%p13_p3) target bundleno = 3 (0x3), region = 73 }
 0x3a5   :  { %1478 = vsyncpa [#allocation3], 1 }
 0x3a6   :  { %1480 = vsyncpa [#allocation3 + $0x1], 1 }

</bundles_post_ra>
